<compile_context>
chip_gen: v6e
topology: v6e:2x2x1
jax: 0.10.0
libtpu: 0.0.40
codegen_flags: <defaults>
</compile_context>

<pallas_src>
import functools

import jax
import jax.numpy as jnp
from jax import lax
from jax.experimental import pallas as pl
from jax.experimental.pallas import tpu as pltpu


def _round_up(x, m):
    return (x + m - 1) // m * m


def fixup_block_kernel(scal_ref, x_ref, w1_ref, w2_ref, gmask_ref, out_ref,
                       pad_scr, rhs_scr, *, W, CP, NPAD, MARGIN):
    """One grid step = one batch tile laid out as a single lane-dense slab.

    Block shapes:
      scal_ref : SMEM (5,) f32            [bias1a, bias1b, bias2a, scale, bias2b]
      x_ref    : VMEM (1, CP, NPAD) f32   gutter/separator-layout activation slab
      w1_ref   : VMEM (CP, 9*CP) bf16     conv1 weight, 3x3 taps folded into K
      w2_ref   : VMEM (CP, 9*CP) bf16     conv2 weight
      gmask_ref: VMEM (1, NPAD) f32       1.0 at real pixels, 0.0 at gutters/separators/pad
      out_ref  : VMEM (1, CP, NPAD) f32
    Scratch:
      pad_scr  : VMEM (CP, MARGIN+NPAD+MARGIN) bf16  persistent zero-margin conv input
      rhs_scr  : VMEM (9*CP, NPAD) bf16              im2col RHS (9 lane-shifted taps)
    """
    Wg = W + 2

    b1a = scal_ref[0]
    b1b = scal_ref[1]
    b2a = scal_ref[2]
    scl = scal_ref[3]
    b2b = scal_ref[4]
    gmask = gmask_ref[...]                                  # (1, NPAD) f32

    # Zero the two margins once; the interior is fully rewritten by every conv call,
    # so the margins stay zero for all later grid steps (grid axis is "arbitrary").
    @pl.when(pl.program_id(0) == 0)
    def _init_margins():
        pad_scr[:, 0:MARGIN] = jnp.zeros((CP, MARGIN), pad_scr.dtype)
        pad_scr[:, MARGIN + NPAD:MARGIN + NPAD + MARGIN] = jnp.zeros(
            (CP, MARGIN), pad_scr.dtype)

    def conv3x3(a, w_ref_):
        # a: (CP, NPAD) f32 conv input, already zero at every non-data column
        # (gutters, separator rows, width pad), so the 9 lane-shifted taps read the
        # conv's SAME zero padding for free.  One dense aligned store of the interior:
        pad_scr[:, MARGIN:MARGIN + NPAD] = a.astype(pad_scr.dtype)
        t = 0
        for dy in (-1, 0, 1):
            for dx in (-1, 0, 1):
                s = dy * Wg + dx
                # Sublane-aligned (CP multiple of 16 for bf16), lane-dense store.
                rhs_scr[t * CP:(t + 1) * CP, :] = pad_scr[:, MARGIN + s:MARGIN + s + NPAD]
                t += 1
        # Single deep bf16 matmul per conv; f32 accumulation on the MXU.
        return jnp.dot(w_ref_[...], rhs_scr[...], preferred_element_type=jnp.float32)

    x = x_ref[0]                                            # (CP, NPAD) f32
    c1 = conv3x3(x + b1a * gmask, w1_ref)                   # conv1(bias1a(x))
    mid = (jnp.maximum(c1 + b1b, 0.0) + b2a) * gmask        # bias1b -> relu -> bias2a,
    #                                                         re-zeroed at non-data cols
    c2 = conv3x3(mid, w2_ref)                               # conv2(...)
    out_ref[0] = jnp.maximum(c2 * scl + b2b + x, 0.0).astype(out_ref.dtype)


def fixup_basic_block(x_nchw, w1_hwio, w2_hwio,
                      bias1a, bias1b, bias2a, scale, bias2b, *, batch_tile=None):
    """NCHW in, NCHW out.  Wrapper only does cheap layout plumbing (pad/transpose)."""
    B, C, H, W = x_nchw.shape
    Cout = w1_hwio.shape[-1]
    assert w1_hwio.shape == (3, 3, C, Cout) and w2_hwio.shape == (3, 3, Cout, Cout)
    assert Cout == C, "downsample=None path requires inplanes == planes"

    Bt = B if batch_tile is None else batch_tile
    assert B % Bt == 0
    G = B // Bt

    Wg = W + 2                          # row width with 2 zero gutter columns
    SEG = (H + 1) * Wg                  # image rows + 1 zero separator row
    N = Bt * SEG                        # RHS / output slab width per grid step
    NPAD = _round_up(max(N, 128), 128)  # lane-dense slab width
    CP = _round_up(C, 16)               # bf16 sublane quantum for RHS tap blocks
    MARGIN = 128                        # zero margin covering the dy=+-1 tap shifts
    assert MARGIN >= W + 3, "margin must cover the largest tap shift (W + 3)"

    # Activation slab (G, CP, NPAD) f32: gutters, separator rows, channel-pad rows and
    # width-pad columns are all zeros.
    xf = x_nchw.astype(jnp.float32)
    xg = jnp.pad(xf, ((0, 0), (0, CP - C), (0, 1), (0, 2)))       # (B, CP, H+1, W+2)
    xg = xg.reshape(G, Bt, CP, SEG)
    xg = jnp.transpose(xg, (0, 2, 1, 3)).reshape(G, CP, N)
    xg = jnp.pad(xg, ((0, 0), (0, 0), (0, NPAD - N)))             # (G, CP, NPAD)

    # Weights: fold the 3x3 taps into the contraction axis, pad channels to CP, bf16.
    # LHS[co, (kh*3 + kw)*CP + ci] matches RHS row block t = (dy+1)*3 + (dx+1).
    def prep_weight(w):
        wt = jnp.transpose(w.astype(jnp.float32), (3, 0, 1, 2))   # (Cout, 3, 3, Cin)
        wt = jnp.pad(wt, ((0, CP - Cout), (0, 0), (0, 0), (0, CP - C)))
        return wt.reshape(CP, 9 * CP).astype(jnp.bfloat16)

    w1_l = prep_weight(w1_hwio)
    w2_l = prep_weight(w2_hwio)

    # Data-column mask: 1.0 at real pixels, 0.0 at gutters / separator rows / width pad.
    m = jnp.zeros((H + 1, Wg), jnp.float32).at[:H, :W].set(1.0).reshape(SEG)
    gmask = jnp.pad(jnp.tile(m, (Bt,)), (0, NPAD - N)).reshape(1, NPAD)

    scalars = jnp.array([bias1a, bias1b, bias2a, scale, bias2b], jnp.float32)

    kernel = functools.partial(fixup_block_kernel, W=W, CP=CP, NPAD=NPAD, MARGIN=MARGIN)
    out_slab = pl.pallas_call(
        kernel,
        out_shape=jax.ShapeDtypeStruct((G, CP, NPAD), jnp.float32),
        grid=(G,),
        in_specs=[
            pl.BlockSpec(memory_space=pltpu.MemorySpace.SMEM),        # scalars
            pl.BlockSpec((1, CP, NPAD), lambda g: (g, 0, 0)),         # x slab (lane dense)
            pl.BlockSpec((CP, 9 * CP), lambda g: (0, 0)),             # conv1 weight
            pl.BlockSpec((CP, 9 * CP), lambda g: (0, 0)),             # conv2 weight
            pl.BlockSpec((1, NPAD), lambda g: (0, 0)),                # data mask
        ],
        out_specs=pl.BlockSpec((1, CP, NPAD), lambda g: (g, 0, 0)),
        scratch_shapes=[
            pltpu.VMEM((CP, MARGIN + NPAD + MARGIN), jnp.bfloat16),   # padded conv input
            pltpu.VMEM((9 * CP, NPAD), jnp.bfloat16),                 # im2col RHS
        ],
        # "arbitrary": the persistent scratch margins are initialized only at step 0.
        compiler_params=pltpu.CompilerParams(dimension_semantics=("arbitrary",)),
    )(scalars, xg, w1_l, w2_l, gmask)

    # Back to NCHW: drop channel pad, width pad, gutter columns and separator rows.
    out = out_slab[:, :Cout, :N].reshape(G, Cout, Bt, SEG)
    out = jnp.transpose(out, (0, 2, 1, 3)).reshape(B, Cout, H + 1, Wg)
    return out[:, :, :H, :W]


def reference_fixup_block(x_nchw, w1_hwio, w2_hwio,
                          bias1a, bias1b, bias2a, scale, bias2b):
    """Pure-JAX reference for correctness checking."""
    x = jnp.transpose(x_nchw, (0, 2, 3, 1)).astype(jnp.float32)
    dn = lax.conv_dimension_numbers(x.shape, w1_hwio.shape, ('NHWC', 'HWIO', 'NHWC'))
    biased = x + bias1a
    out = lax.conv_general_dilated(biased, w1_hwio.astype(jnp.float32), (1, 1), 'SAME',
                                   dimension_numbers=dn)
    out = jnp.maximum(out + bias1b, 0.0)
    out = lax.conv_general_dilated(out + bias2a, w2_hwio.astype(jnp.float32), (1, 1),
                                   'SAME', dimension_numbers=dn)
    out = out * scale + bias2b
    out = jnp.maximum(out + x, 0.0)
    return jnp.transpose(out, (0, 3, 1, 2))


if __name__ == "__main__":
    key = jax.random.PRNGKey(0)
    # Fixup scalar Bias()/Scale() parameters (deterministic, nonzero to exercise the path).
    bias1a, bias1b, bias2a, scale, bias2b = 0.10, -0.05, 0.02, 1.50, 0.03

    configs = [
        (2, 4, 16, 16),   # inplanes = planes = 4, 16x16 spatial (module-consistent)
        (2, 4, 10, 12),   # non-power-of-two spatial: exercises gutter/separator layout
    ]
    for (B, C, H, W) in configs:
        kx, k1, k2, key = jax.random.split(key, 4)
        x = jax.random.normal(kx, (B, C, H, W), jnp.float32)
        w1 = 0.1 * jax.random.normal(k1, (3, 3, C, C), jnp.float32)   # HWIO conv3x3
        w2 = 0.1 * jax.random.normal(k2, (3, 3, C, C), jnp.float32)

        out = fixup_basic_block(x, w1, w2, bias1a, bias1b, bias2a, scale, bias2b)
        out = jax.block_until_ready(out)
        ref = reference_fixup_block(x, w1, w2, bias1a, bias1b, bias2a, scale, bias2b)

        assert out.shape == (B, C, H, W)
        # bf16 MXU operands (f32 accumulation) -> looser tolerance than a pure-f32 run.
        max_diff = float(jnp.max(jnp.abs(out - ref)))
        assert jnp.allclose(out, ref, rtol=5e-2, atol=5e-2), (
            f"mismatch vs reference for shape {(B, C, H, W)}: max abs diff {max_diff}")

    print("KERNEL_OK")
</pallas_src>

<mosaic_0001>
module attributes {stable_mosaic.version = 11 : i64} {
  func.func @fixup_block_kernel(%arg0: i32, %arg1: memref<5xf32, #tpu.memory_space<smem>>, %arg2: memref<1x16x640xf32, #tpu.memory_space<vmem>>, %arg3: memref<16x144xbf16, #tpu.memory_space<vmem>>, %arg4: memref<16x144xbf16, #tpu.memory_space<vmem>>, %arg5: memref<1x640xf32, #tpu.memory_space<vmem>>, %arg6: memref<1x16x640xf32, #tpu.memory_space<vmem>>, %arg7: memref<16x896xbf16, #tpu.memory_space<vmem>>, %arg8: memref<144x640xbf16, #tpu.memory_space<vmem>>) attributes {dimension_semantics = [#tpu.dimension_semantics<arbitrary>], iteration_bounds = array<i64: 1>, scalar_prefetch = 0 : i64, scratch_operands = 2 : i64, tpu.core_type = #tpu.core_type<tc>, window_params = [{transform_indices = @transform_0, window_bounds = array<i64: 5>}, {transform_indices = @transform_1, window_bounds = array<i64: 1, 16, 640>}, {pipeline_mode = #tpu.pipeline_mode<synchronous>, transform_indices = @transform_2, window_bounds = array<i64: 16, 144>}, {pipeline_mode = #tpu.pipeline_mode<synchronous>, transform_indices = @transform_3, window_bounds = array<i64: 16, 144>}, {pipeline_mode = #tpu.pipeline_mode<synchronous>, transform_indices = @transform_4, window_bounds = array<i64: 1, 640>}, {transform_indices = @transform_5, window_bounds = array<i64: 1, 16, 640>}]} {
    %c0 = arith.constant 0 : index
    %0 = memref.load %arg1[%c0] : memref<5xf32, #tpu.memory_space<smem>>
    %c1 = arith.constant 1 : index
    %1 = memref.load %arg1[%c1] : memref<5xf32, #tpu.memory_space<smem>>
    %c2 = arith.constant 2 : index
    %2 = memref.load %arg1[%c2] : memref<5xf32, #tpu.memory_space<smem>>
    %c3 = arith.constant 3 : index
    %3 = memref.load %arg1[%c3] : memref<5xf32, #tpu.memory_space<smem>>
    %c4 = arith.constant 4 : index
    %4 = memref.load %arg1[%c4] : memref<5xf32, #tpu.memory_space<smem>>
    %c0_0 = arith.constant 0 : index
    %c0_1 = arith.constant 0 : index
    %5 = vector.load %arg5[%c0_0, %c0_1] : memref<1x640xf32, #tpu.memory_space<vmem>>, vector<1x640xf32>
    %c0_i32 = arith.constant 0 : i32
    %6 = arith.cmpi eq, %arg0, %c0_i32 : i32
    %7 = arith.extui %6 : i1 to i32
    %c0_i32_2 = arith.constant 0 : i32
    %8 = arith.cmpi ne, %7, %c0_i32_2 : i32
    scf.if %8 {
      %cst_80 = arith.constant 0.000000e+00 : bf16
      %79 = vector.broadcast %cst_80 : bf16 to vector<16x128xbf16>
      %c0_81 = arith.constant 0 : index
      %c0_82 = arith.constant 0 : index
      %80 = vector.load %arg7[%c0_81, %c0_82] : memref<16x896xbf16, #tpu.memory_space<vmem>>, vector<16x128xbf16>
      tpu.vector_store %arg7[%c0_81, %c0_82], %79 {strides = array<i32>} : memref<16x896xbf16, #tpu.memory_space<vmem>>, vector<16x128xbf16>,
      %cst_83 = arith.constant 0.000000e+00 : bf16
      %81 = vector.broadcast %cst_83 : bf16 to vector<16x128xbf16>
      %c0_84 = arith.constant 0 : index
      %c768 = arith.constant 768 : index
      %82 = vector.load %arg7[%c0_84, %c768] : memref<16x896xbf16, #tpu.memory_space<vmem>>, vector<16x128xbf16>
      tpu.vector_store %arg7[%c0_84, %c768], %81 {strides = array<i32>} : memref<16x896xbf16, #tpu.memory_space<vmem>>, vector<16x128xbf16>,
    } else {
    }
    %c0_3 = arith.constant 0 : index
    %c0_4 = arith.constant 0 : index
    %c0_5 = arith.constant 0 : index
    %9 = vector.load %arg2[%c0_3, %c0_4, %c0_5] : memref<1x16x640xf32, #tpu.memory_space<vmem>>, vector<1x16x640xf32>
    %10 = vector.shape_cast %9 : vector<1x16x640xf32> to vector<16x640xf32>
    %11 = vector.broadcast %0 : f32 to vector<1x640xf32>
    %12 = arith.mulf %11, %5 : vector<1x640xf32>
    %13 = vector.broadcast %12 : vector<1x640xf32> to vector<16x640xf32>
    %14 = arith.addf %10, %13 : vector<16x640xf32>
    %15 = arith.truncf %14 : vector<16x640xf32> to vector<16x640xbf16>
    %c0_6 = arith.constant 0 : index
    %c128 = arith.constant 128 : index
    %16 = vector.load %arg7[%c0_6, %c128] : memref<16x896xbf16, #tpu.memory_space<vmem>>, vector<16x640xbf16>
    tpu.vector_store %arg7[%c0_6, %c128], %15 {strides = array<i32>} : memref<16x896xbf16, #tpu.memory_space<vmem>>, vector<16x640xbf16>,
    %c0_7 = arith.constant 0 : index
    %c109 = arith.constant 109 : index
    %17 = vector.load %arg7[%c0_7, %c109] : memref<16x896xbf16, #tpu.memory_space<vmem>>, vector<16x640xbf16>
    %c0_8 = arith.constant 0 : index
    %c0_9 = arith.constant 0 : index
    %18 = vector.load %arg8[%c0_8, %c0_9] : memref<144x640xbf16, #tpu.memory_space<vmem>>, vector<16x640xbf16>
    tpu.vector_store %arg8[%c0_8, %c0_9], %17 {strides = array<i32>} : memref<144x640xbf16, #tpu.memory_space<vmem>>, vector<16x640xbf16>,
    %c0_10 = arith.constant 0 : index
    %c110 = arith.constant 110 : index
    %19 = vector.load %arg7[%c0_10, %c110] : memref<16x896xbf16, #tpu.memory_space<vmem>>, vector<16x640xbf16>
    %c16 = arith.constant 16 : index
    %c0_11 = arith.constant 0 : index
    %20 = vector.load %arg8[%c16, %c0_11] : memref<144x640xbf16, #tpu.memory_space<vmem>>, vector<16x640xbf16>
    tpu.vector_store %arg8[%c16, %c0_11], %19 {strides = array<i32>} : memref<144x640xbf16, #tpu.memory_space<vmem>>, vector<16x640xbf16>,
    %c0_12 = arith.constant 0 : index
    %c111 = arith.constant 111 : index
    %21 = vector.load %arg7[%c0_12, %c111] : memref<16x896xbf16, #tpu.memory_space<vmem>>, vector<16x640xbf16>
    %c32 = arith.constant 32 : index
    %c0_13 = arith.constant 0 : index
    %22 = vector.load %arg8[%c32, %c0_13] : memref<144x640xbf16, #tpu.memory_space<vmem>>, vector<16x640xbf16>
    tpu.vector_store %arg8[%c32, %c0_13], %21 {strides = array<i32>} : memref<144x640xbf16, #tpu.memory_space<vmem>>, vector<16x640xbf16>,
    %c0_14 = arith.constant 0 : index
    %c127 = arith.constant 127 : index
    %23 = vector.load %arg7[%c0_14, %c127] : memref<16x896xbf16, #tpu.memory_space<vmem>>, vector<16x640xbf16>
    %c48 = arith.constant 48 : index
    %c0_15 = arith.constant 0 : index
    %24 = vector.load %arg8[%c48, %c0_15] : memref<144x640xbf16, #tpu.memory_space<vmem>>, vector<16x640xbf16>
    tpu.vector_store %arg8[%c48, %c0_15], %23 {strides = array<i32>} : memref<144x640xbf16, #tpu.memory_space<vmem>>, vector<16x640xbf16>,
    %c0_16 = arith.constant 0 : index
    %c128_17 = arith.constant 128 : index
    %25 = vector.load %arg7[%c0_16, %c128_17] : memref<16x896xbf16, #tpu.memory_space<vmem>>, vector<16x640xbf16>
    %c64 = arith.constant 64 : index
    %c0_18 = arith.constant 0 : index
    %26 = vector.load %arg8[%c64, %c0_18] : memref<144x640xbf16, #tpu.memory_space<vmem>>, vector<16x640xbf16>
    tpu.vector_store %arg8[%c64, %c0_18], %25 {strides = array<i32>} : memref<144x640xbf16, #tpu.memory_space<vmem>>, vector<16x640xbf16>,
    %c0_19 = arith.constant 0 : index
    %c129 = arith.constant 129 : index
    %27 = vector.load %arg7[%c0_19, %c129] : memref<16x896xbf16, #tpu.memory_space<vmem>>, vector<16x640xbf16>
    %c80 = arith.constant 80 : index
    %c0_20 = arith.constant 0 : index
    %28 = vector.load %arg8[%c80, %c0_20] : memref<144x640xbf16, #tpu.memory_space<vmem>>, vector<16x640xbf16>
    tpu.vector_store %arg8[%c80, %c0_20], %27 {strides = array<i32>} : memref<144x640xbf16, #tpu.memory_space<vmem>>, vector<16x640xbf16>,
    %c0_21 = arith.constant 0 : index
    %c145 = arith.constant 145 : index
    %29 = vector.load %arg7[%c0_21, %c145] : memref<16x896xbf16, #tpu.memory_space<vmem>>, vector<16x640xbf16>
    %c96 = arith.constant 96 : index
    %c0_22 = arith.constant 0 : index
    %30 = vector.load %arg8[%c96, %c0_22] : memref<144x640xbf16, #tpu.memory_space<vmem>>, vector<16x640xbf16>
    tpu.vector_store %arg8[%c96, %c0_22], %29 {strides = array<i32>} : memref<144x640xbf16, #tpu.memory_space<vmem>>, vector<16x640xbf16>,
    %c0_23 = arith.constant 0 : index
    %c146 = arith.constant 146 : index
    %31 = vector.load %arg7[%c0_23, %c146] : memref<16x896xbf16, #tpu.memory_space<vmem>>, vector<16x640xbf16>
    %c112 = arith.constant 112 : index
    %c0_24 = arith.constant 0 : index
    %32 = vector.load %arg8[%c112, %c0_24] : memref<144x640xbf16, #tpu.memory_space<vmem>>, vector<16x640xbf16>
    tpu.vector_store %arg8[%c112, %c0_24], %31 {strides = array<i32>} : memref<144x640xbf16, #tpu.memory_space<vmem>>, vector<16x640xbf16>,
    %c0_25 = arith.constant 0 : index
    %c147 = arith.constant 147 : index
    %33 = vector.load %arg7[%c0_25, %c147] : memref<16x896xbf16, #tpu.memory_space<vmem>>, vector<16x640xbf16>
    %c128_26 = arith.constant 128 : index
    %c0_27 = arith.constant 0 : index
    %34 = vector.load %arg8[%c128_26, %c0_27] : memref<144x640xbf16, #tpu.memory_space<vmem>>, vector<16x640xbf16>
    tpu.vector_store %arg8[%c128_26, %c0_27], %33 {strides = array<i32>} : memref<144x640xbf16, #tpu.memory_space<vmem>>, vector<16x640xbf16>,
    %c0_28 = arith.constant 0 : index
    %c0_29 = arith.constant 0 : index
    %35 = vector.load %arg3[%c0_28, %c0_29] : memref<16x144xbf16, #tpu.memory_space<vmem>>, vector<16x144xbf16>
    %c0_30 = arith.constant 0 : index
    %c0_31 = arith.constant 0 : index
    %36 = vector.load %arg8[%c0_30, %c0_31] : memref<144x640xbf16, #tpu.memory_space<vmem>>, vector<144x640xbf16>
    %cst = arith.constant dense<0.000000e+00> : vector<16x640xf32>
    %37 = tpu.matmul %35, %36, %cst {dimension_numbers = #tpu.dot_dimension_numbers<[1], [0], [0], [1], [0, 0, 1, 1], [], []>} : vector<16x144xbf16>, vector<144x640xbf16>, vector<16x640xf32> -> vector<16x640xf32>
    %38 = vector.broadcast %1 : f32 to vector<16x640xf32>
    %39 = arith.addf %37, %38 : vector<16x640xf32>
    %cst_32 = arith.constant 0.000000e+00 : f32
    %40 = vector.broadcast %cst_32 : f32 to vector<16x640xf32>
    %41 = arith.maximumf %39, %40 : vector<16x640xf32>
    %42 = vector.broadcast %2 : f32 to vector<16x640xf32>
    %43 = arith.addf %41, %42 : vector<16x640xf32>
    %44 = vector.broadcast %5 : vector<1x640xf32> to vector<16x640xf32>
    %45 = arith.mulf %43, %44 : vector<16x640xf32>
    %46 = arith.truncf %45 : vector<16x640xf32> to vector<16x640xbf16>
    %c0_33 = arith.constant 0 : index
    %c128_34 = arith.constant 128 : index
    %47 = vector.load %arg7[%c0_33, %c128_34] : memref<16x896xbf16, #tpu.memory_space<vmem>>, vector<16x640xbf16>
    tpu.vector_store %arg7[%c0_33, %c128_34], %46 {strides = array<i32>} : memref<16x896xbf16, #tpu.memory_space<vmem>>, vector<16x640xbf16>,
    %c0_35 = arith.constant 0 : index
    %c109_36 = arith.constant 109 : index
    %48 = vector.load %arg7[%c0_35, %c109_36] : memref<16x896xbf16, #tpu.memory_space<vmem>>, vector<16x640xbf16>
    %c0_37 = arith.constant 0 : index
    %c0_38 = arith.constant 0 : index
    %49 = vector.load %arg8[%c0_37, %c0_38] : memref<144x640xbf16, #tpu.memory_space<vmem>>, vector<16x640xbf16>
    tpu.vector_store %arg8[%c0_37, %c0_38], %48 {strides = array<i32>} : memref<144x640xbf16, #tpu.memory_space<vmem>>, vector<16x640xbf16>,
    %c0_39 = arith.constant 0 : index
    %c110_40 = arith.constant 110 : index
    %50 = vector.load %arg7[%c0_39, %c110_40] : memref<16x896xbf16, #tpu.memory_space<vmem>>, vector<16x640xbf16>
    %c16_41 = arith.constant 16 : index
    %c0_42 = arith.constant 0 : index
    %51 = vector.load %arg8[%c16_41, %c0_42] : memref<144x640xbf16, #tpu.memory_space<vmem>>, vector<16x640xbf16>
    tpu.vector_store %arg8[%c16_41, %c0_42], %50 {strides = array<i32>} : memref<144x640xbf16, #tpu.memory_space<vmem>>, vector<16x640xbf16>,
    %c0_43 = arith.constant 0 : index
    %c111_44 = arith.constant 111 : index
    %52 = vector.load %arg7[%c0_43, %c111_44] : memref<16x896xbf16, #tpu.memory_space<vmem>>, vector<16x640xbf16>
    %c32_45 = arith.constant 32 : index
    %c0_46 = arith.constant 0 : index
    %53 = vector.load %arg8[%c32_45, %c0_46] : memref<144x640xbf16, #tpu.memory_space<vmem>>, vector<16x640xbf16>
    tpu.vector_store %arg8[%c32_45, %c0_46], %52 {strides = array<i32>} : memref<144x640xbf16, #tpu.memory_space<vmem>>, vector<16x640xbf16>,
    %c0_47 = arith.constant 0 : index
    %c127_48 = arith.constant 127 : index
    %54 = vector.load %arg7[%c0_47, %c127_48] : memref<16x896xbf16, #tpu.memory_space<vmem>>, vector<16x640xbf16>
    %c48_49 = arith.constant 48 : index
    %c0_50 = arith.constant 0 : index
    %55 = vector.load %arg8[%c48_49, %c0_50] : memref<144x640xbf16, #tpu.memory_space<vmem>>, vector<16x640xbf16>
    tpu.vector_store %arg8[%c48_49, %c0_50], %54 {strides = array<i32>} : memref<144x640xbf16, #tpu.memory_space<vmem>>, vector<16x640xbf16>,
    %c0_51 = arith.constant 0 : index
    %c128_52 = arith.constant 128 : index
    %56 = vector.load %arg7[%c0_51, %c128_52] : memref<16x896xbf16, #tpu.memory_space<vmem>>, vector<16x640xbf16>
    %c64_53 = arith.constant 64 : index
    %c0_54 = arith.constant 0 : index
    %57 = vector.load %arg8[%c64_53, %c0_54] : memref<144x640xbf16, #tpu.memory_space<vmem>>, vector<16x640xbf16>
    tpu.vector_store %arg8[%c64_53, %c0_54], %56 {strides = array<i32>} : memref<144x640xbf16, #tpu.memory_space<vmem>>, vector<16x640xbf16>,
    %c0_55 = arith.constant 0 : index
    %c129_56 = arith.constant 129 : index
    %58 = vector.load %arg7[%c0_55, %c129_56] : memref<16x896xbf16, #tpu.memory_space<vmem>>, vector<16x640xbf16>
    %c80_57 = arith.constant 80 : index
    %c0_58 = arith.constant 0 : index
    %59 = vector.load %arg8[%c80_57, %c0_58] : memref<144x640xbf16, #tpu.memory_space<vmem>>, vector<16x640xbf16>
    tpu.vector_store %arg8[%c80_57, %c0_58], %58 {strides = array<i32>} : memref<144x640xbf16, #tpu.memory_space<vmem>>, vector<16x640xbf16>,
    %c0_59 = arith.constant 0 : index
    %c145_60 = arith.constant 145 : index
    %60 = vector.load %arg7[%c0_59, %c145_60] : memref<16x896xbf16, #tpu.memory_space<vmem>>, vector<16x640xbf16>
    %c96_61 = arith.constant 96 : index
    %c0_62 = arith.constant 0 : index
    %61 = vector.load %arg8[%c96_61, %c0_62] : memref<144x640xbf16, #tpu.memory_space<vmem>>, vector<16x640xbf16>
    tpu.vector_store %arg8[%c96_61, %c0_62], %60 {strides = array<i32>} : memref<144x640xbf16, #tpu.memory_space<vmem>>, vector<16x640xbf16>,
    %c0_63 = arith.constant 0 : index
    %c146_64 = arith.constant 146 : index
    %62 = vector.load %arg7[%c0_63, %c146_64] : memref<16x896xbf16, #tpu.memory_space<vmem>>, vector<16x640xbf16>
    %c112_65 = arith.constant 112 : index
    %c0_66 = arith.constant 0 : index
    %63 = vector.load %arg8[%c112_65, %c0_66] : memref<144x640xbf16, #tpu.memory_space<vmem>>, vector<16x640xbf16>
    tpu.vector_store %arg8[%c112_65, %c0_66], %62 {strides = array<i32>} : memref<144x640xbf16, #tpu.memory_space<vmem>>, vector<16x640xbf16>,
    %c0_67 = arith.constant 0 : index
    %c147_68 = arith.constant 147 : index
    %64 = vector.load %arg7[%c0_67, %c147_68] : memref<16x896xbf16, #tpu.memory_space<vmem>>, vector<16x640xbf16>
    %c128_69 = arith.constant 128 : index
    %c0_70 = arith.constant 0 : index
    %65 = vector.load %arg8[%c128_69, %c0_70] : memref<144x640xbf16, #tpu.memory_space<vmem>>, vector<16x640xbf16>
    tpu.vector_store %arg8[%c128_69, %c0_70], %64 {strides = array<i32>} : memref<144x640xbf16, #tpu.memory_space<vmem>>, vector<16x640xbf16>,
    %c0_71 = arith.constant 0 : index
    %c0_72 = arith.constant 0 : index
    %66 = vector.load %arg4[%c0_71, %c0_72] : memref<16x144xbf16, #tpu.memory_space<vmem>>, vector<16x144xbf16>
    %c0_73 = arith.constant 0 : index
    %c0_74 = arith.constant 0 : index
    %67 = vector.load %arg8[%c0_73, %c0_74] : memref<144x640xbf16, #tpu.memory_space<vmem>>, vector<144x640xbf16>
    %cst_75 = arith.constant dense<0.000000e+00> : vector<16x640xf32>
    %68 = tpu.matmul %66, %67, %cst_75 {dimension_numbers = #tpu.dot_dimension_numbers<[1], [0], [0], [1], [0, 0, 1, 1], [], []>} : vector<16x144xbf16>, vector<144x640xbf16>, vector<16x640xf32> -> vector<16x640xf32>
    %69 = vector.broadcast %3 : f32 to vector<16x640xf32>
    %70 = arith.mulf %68, %69 : vector<16x640xf32>
    %71 = vector.broadcast %4 : f32 to vector<16x640xf32>
    %72 = arith.addf %70, %71 : vector<16x640xf32>
    %73 = arith.addf %72, %10 : vector<16x640xf32>
    %cst_76 = arith.constant 0.000000e+00 : f32
    %74 = vector.broadcast %cst_76 : f32 to vector<16x640xf32>
    %75 = arith.maximumf %73, %74 : vector<16x640xf32>
    %c0_77 = arith.constant 0 : index
    %c0_78 = arith.constant 0 : index
    %c0_79 = arith.constant 0 : index
    %76 = vector.load %arg6[%c0_77, %c0_78, %c0_79] : memref<1x16x640xf32, #tpu.memory_space<vmem>>, vector<1x16x640xf32>
    %77 = vector.shape_cast %76 : vector<1x16x640xf32> to vector<16x640xf32>
    %78 = vector.shape_cast %75 : vector<16x640xf32> to vector<1x16x640xf32>
    tpu.vector_store %arg6[%c0_77, %c0_78, %c0_79], %78 {strides = array<i32>} : memref<1x16x640xf32, #tpu.memory_space<vmem>>, vector<1x16x640xf32>,
    return
  }
  func.func @transform_0(%arg0: i32) -> i32 {
    %c0_i32 = arith.constant 0 : i32
    %c0_i32_0 = arith.constant 0 : i32
    return %c0_i32 : i32
  }
  func.func @transform_1(%arg0: i32) -> (i32, i32, i32) {
    %c0_i32 = arith.constant 0 : i32
    %c0_i32_0 = arith.constant 0 : i32
    %c0_i32_1 = arith.constant 0 : i32
    return %arg0, %c0_i32, %c0_i32_0 : i32, i32, i32
  }
  func.func @transform_2(%arg0: i32) -> (i32, i32) {
    %c0_i32 = arith.constant 0 : i32
    %c0_i32_0 = arith.constant 0 : i32
    %c0_i32_1 = arith.constant 0 : i32
    return %c0_i32, %c0_i32_0 : i32, i32
  }
  func.func @transform_3(%arg0: i32) -> (i32, i32) {
    %c0_i32 = arith.constant 0 : i32
    %c0_i32_0 = arith.constant 0 : i32
    %c0_i32_1 = arith.constant 0 : i32
    return %c0_i32, %c0_i32_0 : i32, i32
  }
  func.func @transform_4(%arg0: i32) -> (i32, i32) {
    %c0_i32 = arith.constant 0 : i32
    %c0_i32_0 = arith.constant 0 : i32
    %c0_i32_1 = arith.constant 0 : i32
    return %c0_i32, %c0_i32_0 : i32, i32
  }
  func.func @transform_5(%arg0: i32) -> (i32, i32, i32) {
    %c0_i32 = arith.constant 0 : i32
    %c0_i32_0 = arith.constant 0 : i32
    %c0_i32_1 = arith.constant 0 : i32
    return %arg0, %c0_i32, %c0_i32_0 : i32, i32, i32
  }
}

</mosaic_0001>

<bundles_post_ra>
// kernel: tpu_custom_call.1
= control target key start
LH: loop header
LB: loop body
LE: loop exit
PB: predicated region body
PF: predicated region fallthrough
CT: control target
= control target key end

     0   :  { %10 = vsyncpa [#allocation7], 0  ;;  %s3054_s0 = inlined_call_operand.hbm [shape: f32[5], index: 0, kind: input, shape index: {}]   ;;  %s3055_s1 = inlined_call_operand.hbm [shape: f32[1,16,640], index: 1, kind: input, shape index: {}]   ;;  %s3056_s2 = inlined_call_operand.hbm [shape: bf16[16,144], index: 2, kind: input, shape index: {}]   ;;  %s3057_s3 = inlined_call_operand.hbm [shape: bf16[16,144], index: 3, kind: input, shape index: {}]   ;;  %s3058_s4 = inlined_call_operand.vmem [shape: f32[1,640], index: 4, kind: input, shape index: {}]   ;;  %s3059_s5 = inlined_call_operand.hbm [shape: f32[1,16,640], index: 5, kind: output, shape index: {}]  }
   0x1   :  { %11 = vsyncpa [#allocation5], 0 }
   0x2   :  { %12 = vsyncpa [#allocation10], 0 }
   0x3   :  { %13 = vsyncpa [#allocation6], 0  ;;  %s2350_s18 = smov [#allocation9]  }
   0x4   :  { %s39_s19 = sshll.u32 %s2350_s18, 4  ;;  %s40_s19 = int_to_ptr.vmem [resolvable:$true] %s39_s19 }
   0x5   :  { %s2262_s20 = scalar_lea.vmem %s40_s19, 256  ;;  %p2267_p1 = scmp.lt.s32.totalorder %s40_s19, %s40_s19 }
   0x6   :  { %p2263_p0 = scmp.ne.s32.totalorder %s40_s19, %s2262_s20  ;;  %p2268_p2 = scmp.lt.s32.totalorder %s2262_s20, %s2262_s20 }
   0x8   :  { %p2269_p3 = por %p2268_p2, %p2267_p1 }
   0xa   :  { %p2270_p4 = pnand %p2269_p3, %p2263_p0 }
   0xc   :  { %2273 = shalt.err (!%p2270_p4)
}
   0xd   :  { %s2351_s21 = smov 128   ;;  %s2352_s22 = smov 8  }
   0xe   :  { %45 = dma.hbm_to_vmem [thread:$0]  %s3056_s2, 256, %s40_s19, [#allocation10], %s2351_s21, %s2351_s21, %s2352_s22  }
   0xf   :  { %s2353_s25 = smov [#allocation4]   ;;  %s2354_s28 = smov [#allocation8]  }
  0x10   :  { %21 = dma.hbm_to_smem %s3054_s0, 16, %s2353_s25, [#allocation7]  }
  0x11   :  { %s27_s29 = sshll.u32 %s2354_s28, 4  ;;  %s28_s29 = int_to_ptr.vmem [resolvable:$true] %s27_s29 }
  0x12   :  { %s2290_s30 = scalar_lea.vmem %s28_s29, 1280  ;;  %p2295_p6 = scmp.lt.s32.totalorder %s28_s29, %s28_s29 }
  0x13   :  { %p2291_p5 = scmp.ne.s32.totalorder %s28_s29, %s2290_s30  ;;  %p2296_p7 = scmp.lt.s32.totalorder %s2290_s30, %s2290_s30 }
  0x15   :  { %p2297_p8 = por %p2296_p7, %p2295_p6 }
  0x17   :  { %p2298_p9 = pnand %p2297_p8, %p2291_p5 }
  0x19   :  { %2301 = shalt.err (!%p2298_p9)
}
  0x1a   :  { %s2355_s6 = smov 640   ;;  %s2356_s7 = smov 40  }
  0x1b   :  { %33 = dma.hbm_to_vmem [thread:$0]  %s3055_s1, 1280, %s28_s29, [#allocation5], %s2355_s6, %s2355_s6, %s2356_s7  }
  0x1c   :  { %s2357_s0 = smov [#allocation11]  }
  0x1d   :  { %s51_s9 = sshll.u32 %s2357_s0, 4  ;;  %s52_s9 = int_to_ptr.vmem [resolvable:$true] %s51_s9 }
  0x1e   :  { %s2310_s10 = scalar_lea.vmem %s52_s9, 256  ;;  %p2315_p11 = scmp.lt.s32.totalorder %s52_s9, %s52_s9 }
  0x1f   :  { %p2311_p10 = scmp.ne.s32.totalorder %s52_s9, %s2310_s10  ;;  %p2316_p12 = scmp.lt.s32.totalorder %s2310_s10, %s2310_s10 }
  0x21   :  { %p2317_p13 = por %p2316_p12, %p2315_p11 }
  0x23   :  { %p2318_p0 = pnand %p2317_p13, %p2311_p10 }
  0x25   :  { %2321 = shalt.err (!%p2318_p0)
}
  0x26   :  { %57 = dma.hbm_to_vmem [thread:$0]  %s3057_s3, 256, %s52_s9, [#allocation10], %s2351_s21, %s2351_s21, %s2352_s22  }
  0x27   :  { %2342 = dma.done.wait [#allocation7], 16  }
  0x28   :  { %2343 = vsyncadd [#allocation7], 4294967280 }
  0x29   :  { %2344 = dma.done.wait [#allocation5], 1280  }
  0x2a   :  { %2345 = vsyncadd [#allocation5], 4294966016 }
  0x2b   :  { %2346 = dma.done.wait [#allocation10], 512  }
  0x2c   :  { %2347 = vsyncadd [#allocation10], 4294966784 }
  0x2d   :  { %72 = sfence }
  0x2e   :  { %s74_s1 = sld [smem:[#allocation4]]  ;;  %v101_v0 = vlaneseq  ;;  %v2358_v1 = vmov 0   ;;  %v2428_v3 = vld [vmem:[%s3058_s4] sm:$0x1f]  ;;  %v89_v13 = vld [vmem:[#allocation8 + $0x8] sm:$0xff]  ;;  %v94_v15 = vld [vmem:[#allocation8 + $0x30] sm:$0xff] }
  0x2f   :  { %86 = vst [vmem:[#allocation2 + $0x18] sm:$0xf] %v2358_v1  ;;  %84 = vst [vmem:[#allocation2] sm:$0xf] %v2358_v1  ;;  %v92_v10 = vld [vmem:[#allocation8 + $0x20] sm:$0xff]  ;;  %v93_v14 = vld [vmem:[#allocation8 + $0x28] sm:$0xff] }
  0x30   :  { %85 = vst [vmem:[#allocation2 + $0x1c] sm:$0xf] %v2358_v1  ;;  %87 = vst [vmem:[#allocation2 + $0x34] sm:$0xf] %v2358_v1  ;;  %v2423_v2 = vshrl.u32 %v101_v0, 7  ;;  %v88_v12 = vld [vmem:[#allocation8] sm:$0xff] }
  0x31   :  { %v90_v19 = vld [vmem:[#allocation8 + $0x10] sm:$0xff]  ;;  %v91_v20 = vld [vmem:[#allocation8 + $0x18] sm:$0xff]  ;;  %v97_v22 = vld [vmem:[#allocation8 + $0x48] sm:$0xff]  ;;  %s2359_s14 = smov 110   ;;  %s2360_s15 = smov 111   ;;  %vm911_vm0 = vcmask 130048  }
  0x32   :  { %v119_v4 = vsub.s32 4, %v2423_v2  ;;  %v103_v5 = vsub.s32 0, %v2423_v2  ;;  %v107_v6 = vsub.s32 1, %v2423_v2  ;;  %v111_v7 = vsub.s32 2, %v2423_v2  ;;  %v95_v24 = vld [vmem:[#allocation8 + $0x38] sm:$0xff]  ;;  %v96_v25 = vld [vmem:[#allocation8 + $0x40] sm:$0xff] }
  0x33   :  { %v115_v9 = vsub.s32 3, %v2423_v2  ;;  %s2361_s16 = smov 127   ;;  %s2362_s17 = smov 1   ;;  %v2539_v50 = vld [vmem:[#allocation9 + $0x4] ss:$8 sps:$4 sm:$0xff]   ;;  %vm536_vm1 = vcmask 900096  }
  0x34   :  { %v98_v8 = vstv %s74_s1  ;;  %s2363_s18 = smov 17   ;;  %s2364_s19 = smov 18   ;;  %2122 = vmatprep.mubr.msk.bf16.mxu0 %vm911_vm0, %v2539_v50  ;;  %2123 = vmatprep.mubr.msk.bf16.mxu1 %vm911_vm0, %v2539_v50  ;;  %vm204_vm2 = vcmask 1043456   ;;  %vm483_vm3 = vcmask 908288   ;;  %vm430_vm4 = vcmask 1039360  }
  0x35   :  { %v99_v11 = vmul.f32 %v98_v8, %v2428_v3  ;;  %s2365_s20 = smov 19   ;;  %s2366_s21 = smov 109   ;;  %vm365_vm5 = vcmask 7168   ;;  %vm312_vm6 = vcmask 138240   ;;  %vm259_vm7 = vcmask 146432  }
  0x36   :  { %vm206_vm8 = vcmask 154624   ;;  %vm589_vm9 = vcmask 891904   ;;  %s2065_s22 = sld [smem:[#allocation4 + $0x1]]  ;;  %s2367_s27 = smov [#allocation12]  }
  0x37   :  { %v120_v16 = vrot.slane %v99_v11, %v119_v4  ;;  %v104_v17 = vrot.slane %v99_v11, %v103_v5  ;;  %v108_v18 = vrot.slane %v99_v11, %v107_v6  ;;  %v112_v21 = vrot.slane %v99_v11, %v111_v7  ;;  %s2066_s23 = sld [smem:[#allocation4 + $0x2]]  ;;  %s2051_s28 = sshll.u32 %s2367_s27, 4  ;;  %s2052_s28 = int_to_ptr.vmem [resolvable:$true] %s2051_s28 }
  0x38   :  { %v116_v23 = vrot.slane %v99_v11, %v115_v9  ;;  %s2068_s26 = sld [smem:[#allocation4 + $0x4]]  ;;  %s2322_s29 = scalar_lea.vmem %s2052_s28, 1280 }
  0x39   :  { %v130_v26 = vadd.f32 %v120_v16, %v92_v10  ;;  %v2446_v27 = vadd.f32 %v104_v17, %v88_v12  ;;  %v2448_v28 = vadd.f32 %v108_v18, %v89_v13  ;;  %v2450_v29 = vadd.f32 %v104_v17, %v93_v14  ;;  %p2323_p1 = scmp.ne.s32.totalorder %s2052_s28, %s2322_s29  ;;  %p2327_p2 = scmp.lt.s32.totalorder %s2052_s28, %s2052_s28 }
  0x3a   :  { %v2452_v30 = vadd.f32 %v108_v18, %v94_v15  ;;  %v2454_v31 = vadd.f32 %v112_v21, %v90_v19  ;;  %v2456_v32 = vadd.f32 %v116_v23, %v91_v20  ;;  %v135_v33 = vadd.f32 %v120_v16, %v97_v22  ;;  %p2328_p3 = scmp.lt.s32.totalorder %s2322_s29, %s2322_s29 }
  0x3b   :  { %v2183_v34 = vpack.c.bf16 %v130_v26, %v130_v26  ;;  %v2460_v35 = vpack.c.bf16 %v2448_v28, %v2446_v27  ;;  %v2462_v36 = vadd.f32 %v112_v21, %v95_v24  ;;  %v2464_v37 = vadd.f32 %v116_v23, %v96_v25 }
  0x3c   :  { %v2468_v38 = vpack.c.bf16 %v2452_v30, %v2450_v29  ;;  %v2472_v39 = vpack.c.bf16 %v2456_v32, %v2454_v31  ;;  %v2186_v40 = vpack.c.bf16 %v135_v33, %v135_v33  ;;  %p2329_p4 = por %p2328_p3, %p2327_p2 }
  0x3d   :  { %170 = vst [vmem:[#allocation2 + $0x14] sm:$0xf] %v2183_v34  ;;  %168 = vst [vmem:[#allocation2 + $0x4] sm:$0xff] %v2460_v35  ;;  %517 = vrot.lane.b32.xlu0 %v2460_v35, %s2359_s14  ;;  %v2479_v41 = vpack.c.bf16 %v2464_v37, %v2462_v36 }
  0x3e   :  { %171 = vst [vmem:[#allocation2 + $0x20] sm:$0xff] %v2468_v38  ;;  %169 = vst [vmem:[#allocation2 + $0xc] sm:$0xff] %v2472_v39  ;;  %p2330_p5 = pnand %p2329_p4, %p2323_p1 }
  0x3f   :  { %173 = vst [vmem:[#allocation2 + $0x30] sm:$0xf] %v2186_v40  ;;  %172 = vst [vmem:[#allocation2 + $0x28] sm:$0xff] %v2479_v41 }
  0x41   :  { %519 = vrot.lane.b32.xlu0 %v2472_v39, %s2359_s14 }
  0x44   :  { %v507_v42 = vld [vmem:[#allocation2 + $0x14] sm:$0xff]  ;;  %v334_v44 = vld [vmem:[#allocation2] sm:$0xff] }
  0x45   :  { %521 = vrot.lane.b32.xlu1 %v507_v42, %s2359_s14  ;;  %525 = vrot.lane.b32.xlu0 %v2479_v41, %s2359_s14  ;;  %v336_v45 = vld [vmem:[#allocation2 + $0x10] sm:$0xff]  ;;  %v335_v46 = vld [vmem:[#allocation2 + $0x8] sm:$0xff]  ;;  %v337_v48 = vld [vmem:[#allocation2 + $0x1c] sm:$0xff] }
  0x46   :  { %v510_v43 = vld [vmem:[#allocation2 + $0x30] sm:$0xff]  ;;  %v338_v47 = vld [vmem:[#allocation2 + $0x24] sm:$0xff] }
  0x47   :  { %v339_v49 = vld [vmem:[#allocation2 + $0x2c] sm:$0xff]  ;;  %v389_v51 = vld [vmem:[#allocation2 + $0x14] sm:$0xf] }
  0x48   :  { %v392_v52 = vld [vmem:[#allocation2 + $0x30] sm:$0xf]  ;;  %395 = vst [vmem:[#allocation3 + $0xb0] sm:$0xf] %v389_v51 }
  0x49   :  { %523 = vrot.lane.b32.xlu1 %v2468_v38, %s2359_s14  ;;  %464 = vrot.lane.b32.xlu0 %v2460_v35, %s2360_s15  ;;  %398 = vst [vmem:[#allocation3 + $0xc4] sm:$0xf] %v392_v52 }
  0x4d   :  { %527 = vrot.lane.b32.xlu1 %v510_v43, %s2359_s14  ;;  %468 = vrot.lane.b32.xlu0 %v507_v42, %s2360_s15 }
  0x51   :  { %466 = vrot.lane.b32.xlu1 %v2472_v39, %s2360_s15  ;;  %472 = vrot.lane.b32.xlu0 %v2479_v41, %s2360_s15 }
  0x55   :  { %470 = vrot.lane.b32.xlu1 %v2468_v38, %s2360_s15  ;;  %411 = vrot.lane.b32.xlu0 %v2460_v35, %s2361_s16 }
  0x59   :  { %474 = vrot.lane.b32.xlu1 %v510_v43, %s2360_s15  ;;  %415 = vrot.lane.b32.xlu0 %v507_v42, %s2361_s16 }
  0x5d   :  { %413 = vrot.lane.b32.xlu1 %v2472_v39, %s2361_s16  ;;  %419 = vrot.lane.b32.xlu0 %v2479_v41, %s2361_s16 }
  0x61   :  { %417 = vrot.lane.b32.xlu1 %v2468_v38, %s2361_s16  ;;  %346 = vrot.lane.b32.xlu0 %v334_v44, %s2362_s17 }
  0x65   :  { %421 = vrot.lane.b32.xlu1 %v510_v43, %s2361_s16  ;;  %350 = vrot.lane.b32.xlu0 %v336_v45, %s2362_s17 }
  0x69   :  { %348 = vrot.lane.b32.xlu1 %v335_v46, %s2362_s17  ;;  %354 = vrot.lane.b32.xlu0 %v338_v47, %s2362_s17 }
  0x6d   :  { %352 = vrot.lane.b32.xlu1 %v337_v48, %s2362_s17  ;;  %293 = vrot.lane.b32.xlu0 %v334_v44, %s2363_s18 }
  0x71   :  { %356 = vrot.lane.b32.xlu1 %v339_v49, %s2362_s17  ;;  %297 = vrot.lane.b32.xlu0 %v336_v45, %s2363_s18 }
  0x75   :  { %295 = vrot.lane.b32.xlu1 %v335_v46, %s2363_s18  ;;  %301 = vrot.lane.b32.xlu0 %v338_v47, %s2363_s18 }
  0x79   :  { %299 = vrot.lane.b32.xlu1 %v337_v48, %s2363_s18  ;;  %240 = vrot.lane.b32.xlu0 %v334_v44, %s2364_s19 }
  0x7d   :  { %303 = vrot.lane.b32.xlu1 %v339_v49, %s2363_s18  ;;  %244 = vrot.lane.b32.xlu0 %v336_v45, %s2364_s19 }
  0x81   :  { %242 = vrot.lane.b32.xlu1 %v335_v46, %s2364_s19  ;;  %248 = vrot.lane.b32.xlu0 %v338_v47, %s2364_s19 }
  0x85   :  { %246 = vrot.lane.b32.xlu1 %v337_v48, %s2364_s19  ;;  %186 = vrot.lane.b32.xlu0 %v334_v44, %s2365_s20 }
  0x89   :  { %250 = vrot.lane.b32.xlu1 %v339_v49, %s2364_s19  ;;  %190 = vrot.lane.b32.xlu0 %v336_v45, %s2365_s20 }
  0x8d   :  { %188 = vrot.lane.b32.xlu1 %v335_v46, %s2365_s20  ;;  %194 = vrot.lane.b32.xlu0 %v338_v47, %s2365_s20 }
  0x91   :  { %192 = vrot.lane.b32.xlu1 %v337_v48, %s2365_s20  ;;  %570 = vrot.lane.b32.xlu0 %v2460_v35, %s2366_s21 }
  0x95   :  { %196 = vrot.lane.b32.xlu1 %v339_v49, %s2365_s20  ;;  %574 = vrot.lane.b32.xlu0 %v507_v42, %s2366_s21 }
  0x99   :  { %572 = vrot.lane.b32.xlu1 %v2472_v39, %s2366_s21  ;;  %578 = vrot.lane.b32.xlu0 %v2479_v41, %s2366_s21 }
  0x9d   :  { %576 = vrot.lane.b32.xlu1 %v2468_v38, %s2366_s21 }
  0xa1   :  { %580 = vrot.lane.b32.xlu1 %v510_v43, %s2366_s21 }
  0xaf   :  { %v518_v53 = vpop.permute.xlu0 %517 }
  0xb0   :  { %v529_v58 = vrot.slane %v518_v53, 4 }
  0xb3   :  { %v520_v54 = vpop.permute.xlu0 %519 }
  0xb4   :  { %v530_v59 = vrot.slane %v520_v54, 4 }
  0xb6   :  { %v535_v8 = vsel %vm204_vm2, %v529_v58, %v530_v59 }
  0xb7   :  { %v522_v55 = vpop.permute.xlu1 %521  ;;  %v526_v56 = vpop.permute.xlu0 %525  ;;  %v537_v11 = vsel %vm536_vm1, %v518_v53, %v535_v8 }
  0xb8   :  { %v531_v57 = vrot.slane %v522_v55, 4  ;;  %v533_v61 = vrot.slane %v526_v56, 4 }
  0xba   :  { %v540_v60 = vsel %vm536_vm1, %v522_v55, %v531_v57  ;;  %v538_v12 = vsel %vm204_vm2, %v530_v59, %v531_v57 }
  0xbb   :  { %554 = vst [vmem:[#allocation3 + $0x128] sm:$0xf] %v540_v60  ;;  %v524_v62 = vpop.permute.xlu1 %523  ;;  %v465_v63 = vpop.permute.xlu0 %464  ;;  %v539_v23 = vsel %vm536_vm1, %v520_v54, %v538_v12 }
  0xbc   :  { %v532_v0 = vrot.slane %v524_v62, 4  ;;  %v476_v34 = vrot.slane %v465_v63, 4 }
  0xbe   :  { %v541_v10 = vsel %vm204_vm2, %v532_v0, %v533_v61 }
  0xbf   :  { %v528_v13 = vpop.permute.xlu1 %527  ;;  %v542_v14 = vsel %vm536_vm1, %v524_v62, %v541_v10  ;;  %v469_v15 = vpop.permute.xlu0 %468 }
  0xc0   :  { %v534_v16 = vrot.slane %v528_v13, 4  ;;  %v478_v17 = vrot.slane %v469_v15, 4  ;;  %v2113_v18 = vcombine.high %v537_v11, %v542_v14  ;;  %v2112_v19 = vcombine.low %v537_v11, %v542_v14 }
  0xc2   :  { %v545_v20 = vsel %vm536_vm1, %v528_v13, %v534_v16  ;;  %v543_v21 = vsel %vm204_vm2, %v533_v61, %v534_v16  ;;  %v487_v22 = vsel %vm483_vm3, %v469_v15, %v478_v17  ;;  %915 = vmatprep.subr.bf16.mxu0 %v2113_v18 }
  0xc3   :  { %557 = vst [vmem:[#allocation3 + $0x13c] sm:$0xf] %v545_v20  ;;  %v544_v24 = vsel %vm536_vm1, %v526_v56, %v543_v21  ;;  %v467_v25 = vpop.permute.xlu1 %466  ;;  %501 = vst [vmem:[#allocation3 + $0x100] sm:$0xf] %v487_v22  ;;  %v473_v26 = vpop.permute.xlu0 %472  ;;  %916 = vmatpush1.bf16.msra.mxu0 %v2112_v19  ;;  %v2246_v21 = vpack.c.bf16 %v2452_v30, %v2448_v28  ;;  %v2247_v28 = vpack.c.bf16 %v2464_v37, %v2456_v32 }
  0xc4   :  { %v477_v33 = vrot.slane %v467_v25, 4  ;;  %v2115_v35 = vcombine.high %v539_v23, %v544_v24  ;;  %v2114_v38 = vcombine.low %v539_v23, %v544_v24  ;;  %v480_v39 = vrot.slane %v473_v26, 4 }
  0xc5   :  { %v2248_v30 = vpack.c.bf16 %v2450_v29, %v2446_v27 }
  0xc6   :  { %958 = vmatprep.subr.bf16.mxu1 %v2115_v35  ;;  %v482_v42 = vsel %vm204_vm2, %v476_v34, %v477_v33  ;;  %v485_v46 = vsel %vm204_vm2, %v477_v33, %v478_v17 }
  0xc7   :  { %v471_v40 = vpop.permute.xlu1 %470  ;;  %959 = vmatpush1.bf16.msra.mxu1 %v2114_v38  ;;  %v412_v41 = vpop.permute.xlu0 %411  ;;  %v484_v45 = vsel %vm483_vm3, %v465_v63, %v482_v42  ;;  %v486_v58 = vsel %vm483_vm3, %v467_v25, %v485_v46 }
  0xc8   :  { %v479_v43 = vrot.slane %v471_v40, 4  ;;  %v423_v63 = vrot.slane %v412_v41, 4 }
  0xca   :  { %v488_v44 = vsel %vm204_vm2, %v479_v43, %v480_v39 }
  0xcb   :  { %v475_v47 = vpop.permute.xlu1 %474  ;;  %v489_v48 = vsel %vm483_vm3, %v471_v40, %v488_v44  ;;  %v416_v49 = vpop.permute.xlu0 %415 }
  0xcc   :  { %v481_v51 = vrot.slane %v475_v47, 4  ;;  %v425_v52 = vrot.slane %v416_v49, 4  ;;  %v2108_v53 = vcombine.high %v484_v45, %v489_v48  ;;  %v2107_v54 = vcombine.low %v484_v45, %v489_v48 }
  0xcd   :  { %v2249_v48 = vpack.c.bf16 %v2462_v36, %v2454_v31 }
  0xce   :  { %v492_v55 = vsel %vm483_vm3, %v475_v47, %v481_v51  ;;  %v490_v56 = vsel %vm204_vm2, %v480_v39, %v481_v51  ;;  %v434_v57 = vsel %vm430_vm4, %v416_v49, %v425_v52  ;;  %917 = vmatprep.subr.bf16.mxu0 %v2108_v53 }
  0xcf   :  { %504 = vst [vmem:[#allocation3 + $0x114] sm:$0xf] %v492_v55  ;;  %v491_v59 = vsel %vm483_vm3, %v473_v26, %v490_v56  ;;  %v414_v60 = vpop.permute.xlu1 %413  ;;  %448 = vst [vmem:[#allocation3 + $0xd8] sm:$0xf] %v434_v57  ;;  %v420_v61 = vpop.permute.xlu0 %419  ;;  %918 = vmatpush1.bf16.msra.mxu0 %v2107_v54 }
  0xd0   :  { %v424_v62 = vrot.slane %v414_v60, 4  ;;  %v2110_v0 = vcombine.high %v486_v58, %v491_v59  ;;  %v2109_v8 = vcombine.low %v486_v58, %v491_v59  ;;  %v427_v10 = vrot.slane %v420_v61, 4 }
  0xd2   :  { %960 = vmatprep.subr.bf16.mxu1 %v2110_v0  ;;  %v429_v13 = vsel %vm204_vm2, %v423_v63, %v424_v62  ;;  %v432_v17 = vsel %vm204_vm2, %v424_v62, %v425_v52 }
  0xd3   :  { %v418_v11 = vpop.permute.xlu1 %417  ;;  %961 = vmatpush1.bf16.msra.mxu1 %v2109_v8  ;;  %v347_v12 = vpop.permute.xlu0 %346  ;;  %v431_v16 = vsel %vm430_vm4, %v412_v41, %v429_v13  ;;  %v433_v35 = vsel %vm430_vm4, %v414_v60, %v432_v17 }
  0xd4   :  { %v426_v14 = vrot.slane %v418_v11, 4  ;;  %v358_v42 = vrot.slane %v347_v12, 4 }
  0xd6   :  { %v435_v15 = vsel %vm204_vm2, %v426_v14, %v427_v10 }
  0xd7   :  { %v422_v18 = vpop.permute.xlu1 %421  ;;  %v436_v19 = vsel %vm430_vm4, %v418_v11, %v435_v15  ;;  %v351_v20 = vpop.permute.xlu0 %350 }
  0xd8   :  { %v428_v22 = vrot.slane %v422_v18, 4  ;;  %v360_v23 = vrot.slane %v351_v20, 4  ;;  %v2103_v24 = vcombine.high %v431_v16, %v436_v19  ;;  %v2102_v25 = vcombine.low %v431_v16, %v436_v19 }
  0xda   :  { %v439_v26 = vsel %vm430_vm4, %v422_v18, %v428_v22  ;;  %v437_v33 = vsel %vm204_vm2, %v427_v10, %v428_v22  ;;  %v369_v34 = vsel %vm365_vm5, %v351_v20, %v360_v23  ;;  %919 = vmatprep.subr.bf16.mxu0 %v2103_v24 }
  0xdb   :  { %451 = vst [vmem:[#allocation3 + $0xec] sm:$0xf] %v439_v26  ;;  %v438_v38 = vsel %vm430_vm4, %v420_v61, %v437_v33  ;;  %v349_v39 = vpop.permute.xlu1 %348  ;;  %383 = vst [vmem:[#allocation3 + $0x88] sm:$0xf] %v369_v34  ;;  %v355_v40 = vpop.permute.xlu0 %354  ;;  %920 = vmatpush1.bf16.msra.mxu0 %v2102_v25 }
  0xdc   :  { %v359_v41 = vrot.slane %v349_v39, 4  ;;  %v2105_v43 = vcombine.high %v433_v35, %v438_v38  ;;  %v2104_v44 = vcombine.low %v433_v35, %v438_v38  ;;  %921 = vmatprep.subr.bf16.mxu0 %v2246_v21  ;;  %v362_v45 = vrot.slane %v355_v40, 4 }
  0xde   :  { %962 = vmatprep.subr.bf16.mxu1 %v2105_v43  ;;  %v364_v49 = vsel %vm204_vm2, %v358_v42, %v359_v41  ;;  %v367_v37 = vsel %vm204_vm2, %v359_v41, %v360_v23 }
  0xdf   :  { %v353_v46 = vpop.permute.xlu1 %352  ;;  %963 = vmatpush1.bf16.msra.mxu1 %v2104_v44  ;;  %v294_v47 = vpop.permute.xlu0 %293  ;;  %922 = vmatpush1.bf16.msra.mxu0 %v2248_v30  ;;  %v366_v29 = vsel %vm365_vm5, %v347_v12, %v364_v49  ;;  %v368_v59 = vsel %vm365_vm5, %v349_v39, %v367_v37 }
  0xe0   :  { %v361_v32 = vrot.slane %v353_v46, 4  ;;  %964 = vmatprep.subr.bf16.mxu1 %v2247_v28  ;;  %v305_v0 = vrot.slane %v294_v47, 4 }
  0xe2   :  { %v370_v27 = vsel %vm204_vm2, %v361_v32, %v362_v45 }
  0xe3   :  { %v357_v51 = vpop.permute.xlu1 %356  ;;  %v371_v52 = vsel %vm365_vm5, %v353_v46, %v370_v27  ;;  %v298_v53 = vpop.permute.xlu0 %297  ;;  %965 = vmatpush1.bf16.msra.mxu1 %v2249_v48 }
  0xe4   :  { %v363_v54 = vrot.slane %v357_v51, 4  ;;  %v307_v55 = vrot.slane %v298_v53, 4  ;;  %v2093_v56 = vcombine.high %v366_v29, %v371_v52  ;;  %v2092_v31 = vcombine.low %v366_v29, %v371_v52 }
  0xe6   :  { %v374_v36 = vsel %vm365_vm5, %v357_v51, %v363_v54  ;;  %v372_v57 = vsel %vm204_vm2, %v362_v45, %v363_v54  ;;  %v316_v58 = vsel %vm312_vm6, %v298_v53, %v307_v55  ;;  %923 = vmatprep.subr.bf16.mxu0 %v2093_v56 }
  0xe7   :  { %386 = vst [vmem:[#allocation3 + $0x9c] sm:$0xf] %v374_v36  ;;  %v373_v60 = vsel %vm365_vm5, %v355_v40, %v372_v57  ;;  %v296_v61 = vpop.permute.xlu1 %295  ;;  %330 = vst [vmem:[#allocation3 + $0x60] sm:$0xf] %v316_v58  ;;  %v302_v62 = vpop.permute.xlu0 %301  ;;  %924 = vmatpush1.bf16.msra.mxu0 %v2092_v31 }
  0xe8   :  { %v306_v63 = vrot.slane %v296_v61, 4  ;;  %v2095_v8 = vcombine.high %v368_v59, %v373_v60  ;;  %v2094_v10 = vcombine.low %v368_v59, %v373_v60  ;;  %v309_v11 = vrot.slane %v302_v62, 4 }
  0xea   :  { %966 = vmatprep.subr.bf16.mxu1 %v2095_v8  ;;  %v311_v14 = vsel %vm204_vm2, %v305_v0, %v306_v63  ;;  %v314_v18 = vsel %vm204_vm2, %v306_v63, %v307_v55 }
  0xeb   :  { %v300_v12 = vpop.permute.xlu1 %299  ;;  %967 = vmatpush1.bf16.msra.mxu1 %v2094_v10  ;;  %v241_v13 = vpop.permute.xlu0 %240  ;;  %v313_v17 = vsel %vm312_vm6, %v294_v47, %v311_v14  ;;  %v315_v35 = vsel %vm312_vm6, %v296_v61, %v314_v18 }
  0xec   :  { %v308_v15 = vrot.slane %v300_v12, 4  ;;  %v252_v30 = vrot.slane %v241_v13, 4 }
  0xee   :  { %v317_v16 = vsel %vm204_vm2, %v308_v15, %v309_v11 }
  0xef   :  { %v304_v19 = vpop.permute.xlu1 %303  ;;  %v318_v20 = vsel %vm312_vm6, %v300_v12, %v317_v16  ;;  %v245_v21 = vpop.permute.xlu0 %244 }
  0xf0   :  { %v310_v22 = vrot.slane %v304_v19, 4  ;;  %v254_v23 = vrot.slane %v245_v21, 4  ;;  %v2088_v24 = vcombine.high %v313_v17, %v318_v20  ;;  %v2087_v25 = vcombine.low %v313_v17, %v318_v20 }
  0xf2   :  { %v321_v26 = vsel %vm312_vm6, %v304_v19, %v310_v22  ;;  %v319_v33 = vsel %vm204_vm2, %v309_v11, %v310_v22  ;;  %v263_v34 = vsel %vm259_vm7, %v245_v21, %v254_v23  ;;  %925 = vmatprep.subr.bf16.mxu0 %v2088_v24 }
  0xf3   :  { %333 = vst [vmem:[#allocation3 + $0x74] sm:$0xf] %v321_v26  ;;  %v320_v38 = vsel %vm312_vm6, %v302_v62, %v319_v33  ;;  %v243_v39 = vpop.permute.xlu1 %242  ;;  %277 = vst [vmem:[#allocation3 + $0x38] sm:$0xf] %v263_v34  ;;  %v249_v40 = vpop.permute.xlu0 %248  ;;  %926 = vmatpush1.bf16.msra.mxu0 %v2087_v25 }
  0xf4   :  { %v253_v28 = vrot.slane %v243_v39, 4  ;;  %v2090_v41 = vcombine.high %v315_v35, %v320_v38  ;;  %v2089_v42 = vcombine.low %v315_v35, %v320_v38  ;;  %v256_v43 = vrot.slane %v249_v40, 4 }
  0xf6   :  { %968 = vmatprep.subr.bf16.mxu1 %v2090_v41  ;;  %v258_v46 = vsel %vm204_vm2, %v252_v30, %v253_v28  ;;  %v261_v32 = vsel %vm204_vm2, %v253_v28, %v254_v23 }
  0xf7   :  { %v247_v44 = vpop.permute.xlu1 %246  ;;  %969 = vmatpush1.bf16.msra.mxu1 %v2089_v42  ;;  %v187_v45 = vpop.permute.xlu0 %186  ;;  %v260_v49 = vsel %vm259_vm7, %v241_v13, %v258_v46  ;;  %v262_v36 = vsel %vm259_vm7, %v243_v39, %v261_v32 }
  0xf8   :  { %v255_v47 = vrot.slane %v247_v44, 4  ;;  %v198_v61 = vrot.slane %v187_v45, 4 }
  0xfa   :  { %v264_v48 = vsel %vm204_vm2, %v255_v47, %v256_v43 }
  0xfb   :  { %v251_v27 = vpop.permute.xlu1 %250  ;;  %v265_v29 = vsel %vm259_vm7, %v247_v44, %v264_v48  ;;  %v191_v37 = vpop.permute.xlu0 %190 }
  0xfc   :  { %v257_v51 = vrot.slane %v251_v27, 4  ;;  %v200_v52 = vrot.slane %v191_v37, 4  ;;  %v2083_v53 = vcombine.high %v260_v49, %v265_v29  ;;  %v2082_v54 = vcombine.low %v260_v49, %v265_v29 }
  0xfe   :  { %v268_v55 = vsel %vm259_vm7, %v251_v27, %v257_v51  ;;  %v266_v56 = vsel %vm204_vm2, %v256_v43, %v257_v51  ;;  %v210_v31 = vsel %vm206_vm8, %v191_v37, %v200_v52  ;;  %927 = vmatprep.subr.bf16.mxu0 %v2083_v53  ;;  %v2213_v51 = vld [vmem:[#allocation9] ss:$8 sps:$4 sm:$0xff]  }
  0xff   :  { %280 = vst [vmem:[#allocation3 + $0x4c] sm:$0xf] %v268_v55  ;;  %v267_v57 = vsel %vm259_vm7, %v249_v40, %v266_v56  ;;  %v189_v58 = vpop.permute.xlu1 %188  ;;  %224 = vst [vmem:[#allocation3 + $0x10] sm:$0xf] %v210_v31  ;;  %v195_v59 = vpop.permute.xlu0 %194  ;;  %928 = vmatpush1.bf16.msra.mxu0 %v2082_v54  ;;  %v2214_v56 = vld [vmem:[#allocation3 + $0x128] ss:$20 sps:$4 sm:$0xff]  }
 0x100   :  { %v199_v60 = vrot.slane %v189_v58, 4  ;;  %v2085_v62 = vcombine.high %v262_v36, %v267_v57  ;;  %v2084_v63 = vcombine.low %v262_v36, %v267_v57  ;;  %v202_v0 = vrot.slane %v195_v59, 4  ;;  %v2215_v31 = vld [vmem:[#allocation3 + $0x100] ss:$20 sps:$4 sm:$0xff]   ;;  %v2216_v36 = vld [vmem:[#allocation3 + $0xd8] ss:$20 sps:$4 sm:$0xff]  }
 0x101   :  { %v2217_v57 = vld [vmem:[#allocation3 + $0xb0] ss:$20 sps:$4 sm:$0xff]  }
 0x102   :  { %970 = vmatprep.subr.bf16.mxu1 %v2085_v62  ;;  %v205_v11 = vsel %vm204_vm2, %v198_v61, %v199_v60  ;;  %v208_v15 = vsel %vm204_vm2, %v199_v60, %v200_v52  ;;  %v2651_v62 = vstv %s2065_s22 }
 0x103   :  { %v193_v8 = vpop.permute.xlu1 %192  ;;  %971 = vmatpush1.bf16.msra.mxu1 %v2084_v63  ;;  %v571_v10 = vpop.permute.xlu0 %570  ;;  %v207_v14 = vsel %vm206_vm8, %v187_v45, %v205_v11  ;;  %v209_v26 = vsel %vm206_vm8, %v189_v58, %v208_v15  ;;  %v2218_v58 = vld [vmem:[#allocation3 + $0x88] ss:$20 sps:$4 sm:$0xff]   ;;  %v1071_v15 = vrot.slane %v2428_v3, %v107_v6  ;;  %v1075_v6 = vrot.slane %v2428_v3, %v111_v7 }
 0x104   :  { %v201_v12 = vrot.slane %v193_v8, 4  ;;  %v582_v39 = vrot.slane %v571_v10, 4 }
 0x106   :  { %v211_v13 = vsel %vm204_vm2, %v201_v12, %v202_v0  ;;  %v1067_v12 = vrot.slane %v2428_v3, %v103_v5 }
 0x107   :  { %v197_v16 = vpop.permute.xlu1 %196  ;;  %v212_v17 = vsel %vm206_vm8, %v193_v8, %v211_v13  ;;  %v575_v18 = vpop.permute.xlu0 %574  ;;  %v2654_v8 = vstv %s2066_s23 }
 0x108   :  { %v203_v19 = vrot.slane %v197_v16, 4  ;;  %v584_v20 = vrot.slane %v575_v18, 4  ;;  %v2078_v21 = vcombine.high %v207_v14, %v212_v17  ;;  %v2077_v22 = vcombine.low %v207_v14, %v212_v17 }
 0x10a   :  { %v215_v23 = vsel %vm206_vm8, %v197_v16, %v203_v19  ;;  %v213_v24 = vsel %vm204_vm2, %v202_v0, %v203_v19  ;;  %v593_v25 = vsel %vm589_vm9, %v575_v18, %v584_v20  ;;  %929 = vmatprep.subr.bf16.mxu0 %v2078_v21 }
 0x10b   :  { %227 = vst [vmem:[#allocation3 + $0x24] sm:$0xf] %v215_v23  ;;  %v214_v33 = vsel %vm206_vm8, %v195_v59, %v213_v24  ;;  %v573_v34 = vpop.permute.xlu1 %572  ;;  %607 = vst [vmem:[#allocation3 + $0x150] sm:$0xf] %v593_v25  ;;  %v579_v35 = vpop.permute.xlu0 %578  ;;  %930 = vmatpush1.bf16.msra.mxu0 %v2077_v22  ;;  %v2219_v59 = vld [vmem:[#allocation3 + $0x60] ss:$20 sps:$4 sm:$0xff]  }
 0x10c   :  { %v583_v38 = vrot.slane %v573_v34, 4  ;;  %v2080_v40 = vcombine.high %v209_v26, %v214_v33  ;;  %v2079_v28 = vcombine.low %v209_v26, %v214_v33  ;;  %v586_v30 = vrot.slane %v579_v35, 4 }
 0x10d   :  { %v1079_v26 = vrot.slane %v2428_v3, %v115_v9 }
 0x10e   :  { %972 = vmatprep.subr.bf16.mxu1 %v2080_v40  ;;  %v588_v42 = vsel %vm204_vm2, %v582_v39, %v583_v38  ;;  %v591_v48 = vsel %vm204_vm2, %v583_v38, %v584_v20 }
 0x10f   :  { %v577_v41 = vpop.permute.xlu1 %576  ;;  %973 = vmatpush1.bf16.msra.mxu1 %v2079_v28  ;;  %v590_v45 = vsel %vm589_vm9, %v571_v10, %v588_v42  ;;  %v592_v52 = vsel %vm589_vm9, %v573_v34, %v591_v48 }
 0x110   :  { %v585_v43 = vrot.slane %v577_v41, 4 }
 0x112   :  { %v594_v44 = vsel %vm204_vm2, %v585_v43, %v586_v30  ;;  %v2221_v60 = vld [vmem:[#allocation3 + $0x10] ss:$20 sps:$4 sm:$0xff]  }
 0x113   :  { %v581_v46 = vpop.permute.xlu1 %580  ;;  %v595_v47 = vsel %vm589_vm9, %v577_v41, %v594_v44 }
 0x114   :  { %v587_v49 = vrot.slane %v581_v46, 4  ;;  %v2118_v32 = vcombine.high %v590_v45, %v595_v47  ;;  %v2117_v27 = vcombine.low %v590_v45, %v595_v47 }
 0x116   :  { %v598_v29 = vsel %vm589_vm9, %v581_v46, %v587_v49  ;;  %v596_v37 = vsel %vm204_vm2, %v586_v30, %v587_v49  ;;  %945 = vmatprep.subr.bf16.mxu0 %v2118_v32 }
 0x117   :  { %610 = vst [vmem:[#allocation3 + $0x164] sm:$0xf] %v598_v29  ;;  %v597_v53 = vsel %vm589_vm9, %v579_v35, %v596_v37  ;;  %946 = vmatpush2.bf16.msra.mxu0 %v2117_v27 }
 0x118   :  { %v2120_v54 = vcombine.high %v592_v52, %v597_v53  ;;  %v2119_v55 = vcombine.low %v592_v52, %v597_v53  ;;  %1001 = vmatprep.subr.bf16.mxu0 %v2358_v1 }
 0x11a   :  { %988 = vmatprep.subr.bf16.mxu1 %v2120_v54  ;;  %948 = vmatmul.mubr.bf16.vlgmr.msra.gmra.mxu0 %v2213_v51 }
 0x11b   :  { %989 = vmatpush2.bf16.msra.mxu1 %v2119_v55  ;;  %1002 = vmatpush1.bf16.msra.mxu0 %v2214_v56 }
 0x11c   :  { %1003 = vmatprep.subr.bf16.mxu0 %v2358_v1  ;;  %2124 = vmatprep.mubr.msk.bf16.mxu0 %vm911_vm0, %v2539_v50  ;;  %v2220_v50 = vld [vmem:[#allocation3 + $0x38] ss:$20 sps:$4 sm:$0xff]  }
 0x11e   :  { %991 = vmatmul.mubr.bf16.vlgmr.msra.gmra.mxu1 %v2213_v51  ;;  %v2222_v61 = vld [vmem:[#allocation3 + $0x150] ss:$20 sps:$4 sm:$0xff]  }
 0x11f   :  { %1004 = vmatpush1.bf16.msra.mxu0 %v2215_v31 }
 0x120   :  { %1005 = vmatprep.subr.bf16.mxu0 %v2358_v1 }
 0x123   :  { %1006 = vmatpush1.bf16.msra.mxu0 %v2216_v36 }
 0x124   :  { %1007 = vmatprep.subr.bf16.mxu0 %v2358_v1 }
 0x127   :  { %1008 = vmatpush1.bf16.msra.mxu0 %v2217_v57 }
 0x128   :  { %1009 = vmatprep.subr.bf16.mxu0 %v2358_v1 }
 0x12b   :  { %1010 = vmatpush1.bf16.msra.mxu0 %v2218_v58 }
 0x12c   :  { %1011 = vmatprep.subr.bf16.mxu0 %v2358_v1 }
 0x12f   :  { %1012 = vmatpush1.bf16.msra.mxu0 %v2219_v59 }
 0x130   :  { %1013 = vmatprep.subr.bf16.mxu0 %v2358_v1 }
 0x133   :  { %1014 = vmatpush1.bf16.msra.mxu0 %v2220_v50 }
 0x134   :  { %1015 = vmatprep.subr.bf16.mxu0 %v2358_v1 }
 0x137   :  { %1016 = vmatpush1.bf16.msra.mxu0 %v2221_v60 }
 0x138   :  { %1031 = vmatprep.subr.bf16.mxu0 %v2358_v1 }
 0x13b   :  { %1032 = vmatpush2.bf16.msra.mxu0 %v2222_v61  ;;  %v2235_v61 = vld [vmem:[%s3058_s4] sm:$0x1f]  ;;  %s2067_s4 = sld [smem:[#allocation4 + $0x3]] }
 0x13e   :  { %1034 = vmatmul.mubr.bf16.vlgmr.msra.gmra.mxu0 %v2213_v51 }
 0x1da   :  { %v949_v63 = vpop.f32.mrf.mxu0 }
 0x1db   :  { %v950_v0 = vadd.f32 %v949_v63, %v2651_v62  ;;  %v1083_v63 = vrot.slane %v2235_v61, %v119_v4 }
 0x1dc   :  { %v951_v10 = vpop.f32.mrf.mxu0 }
 0x1dd   :  { %v1042_v11 = vmax.f32 %v950_v0, 0.0  ;;  %v952_v13 = vadd.f32 %v951_v10, %v2651_v62 }
 0x1de   :  { %v992_v14 = vpop.f32.mrf.mxu1  ;;  %v953_v16 = vpop.f32.mrf.mxu0 }
 0x1df   :  { %v1053_v17 = vadd.f32 %v2654_v8, %v1042_v11  ;;  %v993_v18 = vadd.f32 %v992_v14, %v2651_v62  ;;  %v1043_v19 = vmax.f32 %v952_v13, 0.0  ;;  %v954_v20 = vadd.f32 %v953_v16, %v2651_v62 }
 0x1e0   :  { %v994_v21 = vpop.f32.mrf.mxu1  ;;  %v955_v22 = vpop.f32.mrf.mxu0 }
 0x1e1   :  { %v2666_v23 = vmul.f32 %v1067_v12, %v1053_v17  ;;  %v1044_v5 = vmax.f32 %v993_v18, 0.0  ;;  %v1054_v24 = vadd.f32 %v2654_v8, %v1043_v19  ;;  %v995_v25 = vadd.f32 %v994_v21, %v2651_v62  ;;  %v2766_v19 = vld [vmem:[#allocation11 + $0x4] ss:$8 sps:$4 sm:$0xff]  }
 0x1e2   :  { %v1047_v33 = vmax.f32 %v954_v20, 0.0  ;;  %v996_v34 = vpop.f32.mrf.mxu1  ;;  %v956_v35 = vadd.f32 %v955_v22, %v2651_v62  ;;  %2178 = vmatprep.mubr.msk.bf16.mxu1 %vm911_vm0, %v2766_v19  ;;  %2179 = vmatprep.mubr.msk.bf16.mxu0 %vm911_vm0, %v2766_v19 }
 0x1e3   :  { %v1055_v38 = vadd.f32 %v2654_v8, %v1044_v5  ;;  %v2678_v39 = vmul.f32 %v1071_v15, %v1054_v24  ;;  %v1045_v40 = vmax.f32 %v995_v25, 0.0  ;;  %v997_v28 = vadd.f32 %v996_v34, %v2651_v62 }
 0x1e4   :  { %v1058_v30 = vadd.f32 %v2654_v8, %v1047_v33  ;;  %v1048_v41 = vmax.f32 %v956_v35, 0.0  ;;  %v998_v42 = vpop.f32.mrf.mxu1 }
 0x1e5   :  { %v2684_v7 = vpack.c.bf16 %v2678_v39, %v2666_v23  ;;  %v1056_v3 = vadd.f32 %v2654_v8, %v1045_v40  ;;  %v1049_v9 = vmax.f32 %v997_v28, 0.0  ;;  %v999_v44 = vadd.f32 %v998_v42, %v2651_v62 }
 0x1e6   :  { %v1059_v43 = vadd.f32 %v2654_v8, %v1048_v41  ;;  %v2689_v45 = vmul.f32 %v1075_v6, %v1055_v38  ;;  %v2696_v47 = vmul.f32 %v1067_v12, %v1058_v30 }
 0x1e7   :  { %1131 = vst [vmem:[#allocation2 + $0x4] sm:$0xff] %v2684_v7  ;;  %v2692_v46 = vmul.f32 %v1079_v26, %v1056_v3  ;;  %1473 = vrot.lane.b32.xlu0 %v2684_v7, %s2359_s14  ;;  %v1060_v48 = vadd.f32 %v2654_v8, %v1049_v9  ;;  %v1050_v32 = vmax.f32 %v999_v44, 0.0 }
 0x1e8   :  { %v2699_v49 = vmul.f32 %v1071_v15, %v1059_v43  ;;  %v2250_v53 = vpack.c.bf16 %v2696_v47, %v2666_v23 }
 0x1e9   :  { %v2188_v27 = vpack.c.bf16 %v2692_v46, %v2689_v45  ;;  %v1061_v37 = vadd.f32 %v2654_v8, %v1050_v32  ;;  %v2711_v51 = vmul.f32 %v1075_v6, %v1060_v48 }
 0x1ea   :  { %v2705_v29 = vpack.c.bf16 %v2699_v49, %v2696_v47  ;;  %v2251_v54 = vpack.c.bf16 %v2699_v49, %v2678_v39 }
 0x1eb   :  { %1132 = vst [vmem:[#allocation2 + $0xc] sm:$0xff] %v2188_v27  ;;  %1475 = vrot.lane.b32.xlu1 %v2188_v27, %s2359_s14  ;;  %1421 = vrot.lane.b32.xlu0 %v2684_v7, %s2360_s15  ;;  %v2714_v52 = vmul.f32 %v1079_v26, %v1061_v37  ;;  %v2252_v56 = vpack.c.bf16 %v2711_v51, %v2689_v45 }
 0x1ec   :  { %1134 = vst [vmem:[#allocation2 + $0x20] sm:$0xff] %v2705_v29 }
 0x1ed   :  { %v2191_v55 = vpack.c.bf16 %v2714_v52, %v2711_v51  ;;  %v2253_v31 = vpack.c.bf16 %v2714_v52, %v2692_v46 }
 0x1ee   :  { %v1293_v36 = vld [vmem:[#allocation2] sm:$0xff] }
 0x1ef   :  { %1423 = vrot.lane.b32.xlu1 %v2188_v27, %s2360_s15  ;;  %1369 = vrot.lane.b32.xlu0 %v2684_v7, %s2361_s16  ;;  %1135 = vst [vmem:[#allocation2 + $0x28] sm:$0xff] %v2191_v55 }
 0x1f2   :  { %v1294_v57 = vld [vmem:[#allocation2 + $0x8] sm:$0xff] }
 0x1f3   :  { %1371 = vrot.lane.b32.xlu1 %v2188_v27, %s2361_s16  ;;  %1305 = vrot.lane.b32.xlu0 %v1293_v36, %s2362_s17 }
 0x1f6   :  { %v1297_v18 = vld [vmem:[#allocation2 + $0x24] sm:$0xff] }
 0x1f7   :  { %1307 = vrot.lane.b32.xlu1 %v1294_v57, %s2362_s17  ;;  %1253 = vrot.lane.b32.xlu0 %v1293_v36, %s2363_s18 }
 0x1fb   :  { %1255 = vrot.lane.b32.xlu1 %v1294_v57, %s2363_s18  ;;  %1201 = vrot.lane.b32.xlu0 %v1293_v36, %s2364_s19 }
 0x1fe   :  { %v1035_v58 = vpop.f32.mrf.mxu0 }
 0x1ff   :  { %v1036_v59 = vadd.f32 %v1035_v58, %v2651_v62  ;;  %1203 = vrot.lane.b32.xlu1 %v1294_v57, %s2364_s19  ;;  %1149 = vrot.lane.b32.xlu0 %v1293_v36, %s2365_s20 }
 0x200   :  { %v1037_v50 = vpop.f32.mrf.mxu0 }
 0x201   :  { %v1046_v60 = vmax.f32 %v1036_v59, 0.0 }
 0x202   :  { %v1038_v0 = vpop.f32.mrf.mxu0 }
 0x203   :  { %v1057_v10 = vadd.f32 %v2654_v8, %v1046_v60  ;;  %v1039_v11 = vadd.f32 %v1038_v0, %v2651_v62  ;;  %1151 = vrot.lane.b32.xlu1 %v1294_v57, %s2365_s20  ;;  %1479 = vrot.lane.b32.xlu0 %v2705_v29, %s2359_s14 }
 0x204   :  { %v1040_v12 = vpop.f32.mrf.mxu0 }
 0x205   :  { %v1093_v13 = vmul.f32 %v1083_v63, %v1057_v10  ;;  %v1051_v14 = vmax.f32 %v1039_v11, 0.0 }
 0x207   :  { %v2189_v15 = vpack.c.bf16 %v1093_v13, %v1093_v13  ;;  %v1062_v16 = vadd.f32 %v2654_v8, %v1051_v14  ;;  %1481 = vrot.lane.b32.xlu1 %v2191_v55, %s2359_s14  ;;  %1427 = vrot.lane.b32.xlu0 %v2705_v29, %s2360_s15  ;;  %v1296_v8 = vld [vmem:[#allocation2 + $0x1c] sm:$0xff] }
 0x209   :  { %1133 = vst [vmem:[#allocation2 + $0x14] sm:$0xf] %v2189_v15  ;;  %v1098_v2 = vmul.f32 %v1083_v63, %v1062_v16 }
 0x20b   :  { %v2192_v4 = vpack.c.bf16 %v1098_v2, %v1098_v2  ;;  %1429 = vrot.lane.b32.xlu1 %v2191_v55, %s2360_s15  ;;  %1375 = vrot.lane.b32.xlu0 %v2705_v29, %s2361_s16 }
 0x20d   :  { %1136 = vst [vmem:[#allocation2 + $0x30] sm:$0xf] %v2192_v4 }
 0x20f   :  { %1377 = vrot.lane.b32.xlu1 %v2191_v55, %s2361_s16  ;;  %1525 = vrot.lane.b32.xlu0 %v2684_v7, %s2366_s21 }
 0x210   :  { %v1347_v62 = vld [vmem:[#allocation2 + $0x14] sm:$0xf] }
 0x211   :  { %1353 = vst [vmem:[#allocation3 + $0xb0] sm:$0xf] %v1347_v62  ;;  %v1463_v20 = vld [vmem:[#allocation2 + $0x14] sm:$0xff] }
 0x212   :  { %v1295_v22 = vld [vmem:[#allocation2 + $0x10] sm:$0xff] }
 0x213   :  { %1527 = vrot.lane.b32.xlu1 %v2188_v27, %s2366_s21  ;;  %1311 = vrot.lane.b32.xlu0 %v1296_v8, %s2362_s17 }
 0x214   :  { %v1350_v17 = vld [vmem:[#allocation2 + $0x30] sm:$0xf] }
 0x215   :  { %1356 = vst [vmem:[#allocation3 + $0xc4] sm:$0xf] %v1350_v17  ;;  %v1466_v21 = vld [vmem:[#allocation2 + $0x30] sm:$0xff] }
 0x216   :  { %v1298_v5 = vld [vmem:[#allocation2 + $0x2c] sm:$0xff] }
 0x217   :  { %1313 = vrot.lane.b32.xlu1 %v1297_v18, %s2362_s17  ;;  %1259 = vrot.lane.b32.xlu0 %v1296_v8, %s2363_s18 }
 0x21b   :  { %1261 = vrot.lane.b32.xlu1 %v1297_v18, %s2363_s18  ;;  %1207 = vrot.lane.b32.xlu0 %v1296_v8, %s2364_s19 }
 0x21f   :  { %1209 = vrot.lane.b32.xlu1 %v1297_v18, %s2364_s19  ;;  %1155 = vrot.lane.b32.xlu0 %v1296_v8, %s2365_s20 }
 0x223   :  { %1157 = vrot.lane.b32.xlu1 %v1297_v18, %s2365_s20  ;;  %1531 = vrot.lane.b32.xlu0 %v2705_v29, %s2366_s21 }
 0x227   :  { %1533 = vrot.lane.b32.xlu1 %v2191_v55, %s2366_s21  ;;  %1477 = vrot.lane.b32.xlu0 %v1463_v20, %s2359_s14 }
 0x22b   :  { %1483 = vrot.lane.b32.xlu1 %v1466_v21, %s2359_s14  ;;  %1425 = vrot.lane.b32.xlu0 %v1463_v20, %s2360_s15 }
 0x22f   :  { %1431 = vrot.lane.b32.xlu1 %v1466_v21, %s2360_s15  ;;  %1373 = vrot.lane.b32.xlu0 %v1463_v20, %s2361_s16 }
 0x233   :  { %1379 = vrot.lane.b32.xlu1 %v1466_v21, %s2361_s16  ;;  %1309 = vrot.lane.b32.xlu0 %v1295_v22, %s2362_s17 }
 0x237   :  { %1315 = vrot.lane.b32.xlu1 %v1298_v5, %s2362_s17  ;;  %1257 = vrot.lane.b32.xlu0 %v1295_v22, %s2363_s18 }
 0x23b   :  { %1263 = vrot.lane.b32.xlu1 %v1298_v5, %s2363_s18  ;;  %1205 = vrot.lane.b32.xlu0 %v1295_v22, %s2364_s19 }
 0x23f   :  { %1211 = vrot.lane.b32.xlu1 %v1298_v5, %s2364_s19  ;;  %1153 = vrot.lane.b32.xlu0 %v1295_v22, %s2365_s20 }
 0x243   :  { %1159 = vrot.lane.b32.xlu1 %v1298_v5, %s2365_s20  ;;  %1529 = vrot.lane.b32.xlu0 %v1463_v20, %s2366_s21 }
 0x247   :  { %1535 = vrot.lane.b32.xlu1 %v1466_v21, %s2366_s21 }
 0x259   :  { %v1474_v24 = vpop.permute.xlu0 %1473 }
 0x25a   :  { %v1485_v33 = vrot.slane %v1474_v24, 4 }
 0x25d   :  { %v2792_v25 = vpop.permute.xlu1 %1475  ;;  %v1422_v6 = vpop.permute.xlu0 %1421 }
 0x25e   :  { %v1486_v26 = vrot.slane %v2792_v25, 4  ;;  %v1433_v30 = vrot.slane %v1422_v6, 4 }
 0x260   :  { %v1491_v34 = vsel %vm204_vm2, %v1485_v33, %v1486_v26 }
 0x261   :  { %v1492_v35 = vsel %vm536_vm1, %v1474_v24, %v1491_v34  ;;  %v2799_v38 = vpop.permute.xlu1 %1423  ;;  %v1370_v40 = vpop.permute.xlu0 %1369 }
 0x262   :  { %v1434_v28 = vrot.slane %v2799_v38, 4  ;;  %v1381_v43 = vrot.slane %v1370_v40, 4 }
 0x264   :  { %v1439_v41 = vsel %vm204_vm2, %v1433_v30, %v1434_v28 }
 0x265   :  { %v1440_v42 = vsel %vm483_vm3, %v1422_v6, %v1439_v41  ;;  %v2806_v7 = vpop.permute.xlu1 %1371  ;;  %v1306_v3 = vpop.permute.xlu0 %1305 }
 0x266   :  { %v1382_v9 = vrot.slane %v2806_v7, 4  ;;  %v1317_v37 = vrot.slane %v1306_v3, 4 }
 0x268   :  { %v1387_v44 = vsel %vm204_vm2, %v1381_v43, %v1382_v9 }
 0x269   :  { %v1388_v48 = vsel %vm430_vm4, %v1370_v40, %v1387_v44  ;;  %v2813_v32 = vpop.permute.xlu1 %1307  ;;  %v1254_v27 = vpop.permute.xlu0 %1253 }
 0x26a   :  { %v1318_v29 = vrot.slane %v2813_v32, 4  ;;  %v1265_v50 = vrot.slane %v1254_v27, 4 }
 0x26c   :  { %v1323_v55 = vsel %vm204_vm2, %v1317_v37, %v1318_v29 }
 0x26d   :  { %v2820_v36 = vsel %vm365_vm5, %v1306_v3, %v1323_v55  ;;  %v2822_v57 = vpop.permute.xlu1 %1255  ;;  %v1202_v58 = vpop.permute.xlu0 %1201 }
 0x26e   :  { %v1266_v59 = vrot.slane %v2822_v57, 4  ;;  %v1213_v11 = vrot.slane %v1202_v58, 4 }
 0x270   :  { %v1271_v60 = vsel %vm204_vm2, %v1265_v50, %v1266_v59 }
 0x271   :  { %v2829_v61 = vsel %vm312_vm6, %v1254_v27, %v1271_v60  ;;  %v2831_v63 = vpop.permute.xlu1 %1203  ;;  %v1150_v0 = vpop.permute.xlu0 %1149 }
 0x272   :  { %v1214_v10 = vrot.slane %v2831_v63, 4  ;;  %v1161_v2 = vrot.slane %v1150_v0, 4 }
 0x274   :  { %v1219_v12 = vsel %vm204_vm2, %v1213_v11, %v1214_v10 }
 0x275   :  { %v2838_v13 = vsel %vm259_vm7, %v1202_v58, %v1219_v12  ;;  %v2840_v14 = vpop.permute.xlu1 %1151  ;;  %v1480_v15 = vpop.permute.xlu0 %1479 }
 0x276   :  { %v1162_v16 = vrot.slane %v2840_v14, 4  ;;  %v1488_v20 = vrot.slane %v1480_v15, 4 }
 0x278   :  { %v1167_v4 = vsel %vm204_vm2, %v1161_v2, %v1162_v16 }
 0x279   :  { %v2847_v62 = vsel %vm206_vm8, %v1150_v0, %v1167_v4  ;;  %v2849_v8 = vpop.permute.xlu1 %1481  ;;  %v1428_v17 = vpop.permute.xlu0 %1427 }
 0x27a   :  { %v1489_v18 = vrot.slane %v2849_v8, 4  ;;  %v1436_v33 = vrot.slane %v1428_v17, 4 }
 0x27c   :  { %v1496_v21 = vsel %vm204_vm2, %v1488_v20, %v1489_v18 }
 0x27d   :  { %v1497_v22 = vsel %vm536_vm1, %v1480_v15, %v1496_v21  ;;  %v2856_v5 = vpop.permute.xlu1 %1429  ;;  %v1376_v24 = vpop.permute.xlu0 %1375 }
 0x27e   :  { %v1437_v6 = vrot.slane %v2856_v5, 4  ;;  %v2168_v34 = vcombine.low %v1492_v35, %v1497_v22  ;;  %v2169_v40 = vcombine.high %v1492_v35, %v1497_v22  ;;  %v1384_v27 = vrot.slane %v1376_v24, 4 }
 0x280   :  { %v1444_v30 = vsel %vm204_vm2, %v1436_v33, %v1437_v6  ;;  %1867 = vmatprep.subr.bf16.mxu1 %v2169_v40 }
 0x281   :  { %v1445_v41 = vsel %vm483_vm3, %v1428_v17, %v1444_v30  ;;  %v2863_v3 = vpop.permute.xlu1 %1377  ;;  %v1526_v43 = vpop.permute.xlu0 %1525  ;;  %1868 = vmatpush1.bf16.msra.mxu1 %v2168_v34 }
 0x282   :  { %v1385_v44 = vrot.slane %v2863_v3, 4  ;;  %v2163_v37 = vcombine.low %v1440_v42, %v1445_v41  ;;  %v2164_v55 = vcombine.high %v1440_v42, %v1445_v41  ;;  %v1537_v11 = vrot.slane %v1526_v43, 4 }
 0x284   :  { %v1392_v35 = vsel %vm204_vm2, %v1384_v27, %v1385_v44  ;;  %1869 = vmatprep.subr.bf16.mxu1 %v2164_v55 }
 0x285   :  { %v1393_v58 = vsel %vm430_vm4, %v1376_v24, %v1392_v35  ;;  %v2870_v50 = vpop.permute.xlu1 %1527  ;;  %v1312_v60 = vpop.permute.xlu0 %1311  ;;  %1870 = vmatpush1.bf16.msra.mxu1 %v2163_v37 }
 0x286   :  { %v1538_v0 = vrot.slane %v2870_v50, 4  ;;  %v2158_v12 = vcombine.low %v1388_v48, %v1393_v58  ;;  %v2159_v15 = vcombine.high %v1388_v48, %v1393_v58  ;;  %v1320_v21 = vrot.slane %v1312_v60, 4 }
 0x288   :  { %v1543_v42 = vsel %vm204_vm2, %v1537_v11, %v1538_v0  ;;  %1871 = vmatprep.subr.bf16.mxu1 %v2159_v15 }
 0x289   :  { %v2877_v2 = vsel %vm589_vm9, %v1526_v43, %v1543_v42  ;;  %v2879_v4 = vpop.permute.xlu1 %1313  ;;  %v1260_v17 = vpop.permute.xlu0 %1259  ;;  %1872 = vmatpush1.bf16.msra.mxu1 %v2158_v12 }
 0x28a   :  { %v1321_v20 = vrot.slane %v2879_v4, 4  ;;  %1873 = vmatprep.subr.bf16.mxu1 %v2251_v54  ;;  %v1268_v40 = vrot.slane %v1260_v17, 4 }
 0x28c   :  { %v1328_v48 = vsel %vm204_vm2, %v1320_v21, %v1321_v20 }
 0x28d   :  { %v1329_v22 = vsel %vm365_vm5, %v1312_v60, %v1328_v48  ;;  %v2889_v24 = vpop.permute.xlu1 %1261  ;;  %v1208_v33 = vpop.permute.xlu0 %1207  ;;  %1874 = vmatpush1.bf16.msra.mxu1 %v2250_v53 }
 0x28e   :  { %v1269_v34 = vrot.slane %v2889_v24, 4  ;;  %v2148_v30 = vcombine.low %v2820_v36, %v1329_v22  ;;  %v2149_v39 = vcombine.high %v2820_v36, %v1329_v22  ;;  %v1216_v47 = vrot.slane %v1208_v33, 4 }
 0x290   :  { %v1276_v49 = vsel %vm204_vm2, %v1268_v40, %v1269_v34  ;;  %1875 = vmatprep.subr.bf16.mxu1 %v2149_v39 }
 0x291   :  { %v1277_v54 = vsel %vm312_vm6, %v1260_v17, %v1276_v49  ;;  %v2901_v41 = vpop.permute.xlu1 %1209  ;;  %v1156_v43 = vpop.permute.xlu0 %1155  ;;  %1876 = vmatpush1.bf16.msra.mxu1 %v2148_v30 }
 0x292   :  { %v1217_v23 = vrot.slane %v2901_v41, 4  ;;  %v2143_v53 = vcombine.low %v2829_v61, %v1277_v54  ;;  %v2144_v27 = vcombine.high %v2829_v61, %v1277_v54  ;;  %v1164_v60 = vrot.slane %v1156_v43, 4 }
 0x294   :  { %v1224_v36 = vsel %vm204_vm2, %v1216_v47, %v1217_v23  ;;  %1877 = vmatprep.subr.bf16.mxu1 %v2144_v27 }
 0x295   :  { %v1225_v37 = vsel %vm259_vm7, %v1208_v33, %v1224_v36  ;;  %v2910_v55 = vpop.permute.xlu1 %1157  ;;  %v1532_v35 = vpop.permute.xlu0 %1531  ;;  %1878 = vmatpush1.bf16.msra.mxu1 %v2143_v53 }
 0x296   :  { %v1165_v58 = vrot.slane %v2910_v55, 4  ;;  %v2138_v11 = vcombine.low %v2838_v13, %v1225_v37  ;;  %v2139_v12 = vcombine.high %v2838_v13, %v1225_v37  ;;  %v1540_v17 = vrot.slane %v1532_v35, 4 }
 0x298   :  { %v1172_v61 = vsel %vm204_vm2, %v1164_v60, %v1165_v58  ;;  %1879 = vmatprep.subr.bf16.mxu1 %v2139_v12  ;;  %v2944_v60 = vld [vmem:[#allocation11] ss:$8 sps:$4 sm:$0xff]  }
 0x299   :  { %v1173_v15 = vsel %vm206_vm8, %v1156_v43, %v1172_v61  ;;  %v2919_v42 = vpop.permute.xlu1 %1533  ;;  %v1478_v21 = vpop.permute.xlu0 %1477  ;;  %1880 = vmatpush1.bf16.msra.mxu1 %v2138_v11 }
 0x29a   :  { %v1541_v48 = vrot.slane %v2919_v42, 4  ;;  %v1487_v22 = vrot.slane %v1478_v21, 4  ;;  %v2133_v33 = vcombine.low %v2847_v62, %v1173_v15  ;;  %v2134_v40 = vcombine.high %v2847_v62, %v1173_v15 }
 0x29c   :  { %v1548_v13 = vsel %vm204_vm2, %v1540_v17, %v1541_v48  ;;  %v1493_v30 = vsel %vm204_vm2, %v1486_v26, %v1487_v22  ;;  %v1495_v39 = vsel %vm536_vm1, %v1478_v21, %v1487_v22  ;;  %1881 = vmatprep.subr.bf16.mxu1 %v2134_v40 }
 0x29d   :  { %v1549_v49 = vsel %vm589_vm9, %v1532_v35, %v1548_v13  ;;  %v1484_v54 = vpop.permute.xlu1 %1483  ;;  %v1494_v43 = vsel %vm536_vm1, %v2792_v25, %v1493_v30  ;;  %1509 = vst [vmem:[#allocation3 + $0x128] sm:$0xf] %v1495_v39  ;;  %v1426_v47 = vpop.permute.xlu0 %1425  ;;  %1882 = vmatpush1.bf16.msra.mxu1 %v2133_v33 }
 0x29e   :  { %v1490_v62 = vrot.slane %v1484_v54, 4  ;;  %v1435_v53 = vrot.slane %v1426_v47, 4  ;;  %v2173_v27 = vcombine.low %v2877_v2, %v1549_v49  ;;  %v2174_v36 = vcombine.high %v2877_v2, %v1549_v49 }
 0x2a0   :  { %v1498_v26 = vsel %vm204_vm2, %v1489_v18, %v1490_v62  ;;  %v1500_v37 = vsel %vm536_vm1, %v1484_v54, %v1490_v62  ;;  %v1441_v35 = vsel %vm204_vm2, %v1434_v28, %v1435_v53  ;;  %v1443_v25 = vsel %vm483_vm3, %v1426_v47, %v1435_v53  ;;  %1897 = vmatprep.subr.bf16.mxu1 %v2174_v36 }
 0x2a1   :  { %v1499_v11 = vsel %vm536_vm1, %v2849_v8, %v1498_v26  ;;  %1512 = vst [vmem:[#allocation3 + $0x13c] sm:$0xf] %v1500_v37  ;;  %v1432_v2 = vpop.permute.xlu1 %1431  ;;  %v1442_v12 = vsel %vm483_vm3, %v2799_v38, %v1441_v35  ;;  %1457 = vst [vmem:[#allocation3 + $0x100] sm:$0xf] %v1443_v25  ;;  %v1374_v18 = vpop.permute.xlu0 %1373  ;;  %1898 = vmatpush2.bf16.msra.mxu1 %v2173_v27 }
 0x2a2   :  { %v1438_v61 = vrot.slane %v1432_v2, 4  ;;  %v1383_v15 = vrot.slane %v1374_v18, 4  ;;  %v2170_v17 = vcombine.low %v1494_v43, %v1499_v11  ;;  %v2171_v28 = vcombine.high %v1494_v43, %v1499_v11  ;;  %1953 = vmatprep.subr.bf16.mxu1 %v2358_v1 }
 0x2a4   :  { %v1446_v21 = vsel %vm204_vm2, %v1437_v6, %v1438_v61  ;;  %v1448_v8 = vsel %vm483_vm3, %v1432_v2, %v1438_v61  ;;  %v1389_v22 = vsel %vm204_vm2, %v1382_v9, %v1383_v15  ;;  %v1391_v38 = vsel %vm430_vm4, %v1374_v18, %v1383_v15  ;;  %1900 = vmatmul.mubr.bf16.vlgmr.msra.gmra.mxu1 %v2944_v60 }
 0x2a5   :  { %v1447_v33 = vsel %vm483_vm3, %v2856_v5, %v1446_v21  ;;  %1460 = vst [vmem:[#allocation3 + $0x114] sm:$0xf] %v1448_v8  ;;  %v1380_v40 = vpop.permute.xlu1 %1379  ;;  %v1390_v13 = vsel %vm430_vm4, %v2806_v7, %v1389_v22  ;;  %1405 = vst [vmem:[#allocation3 + $0xd8] sm:$0xf] %v1391_v38  ;;  %v1310_v6 = vpop.permute.xlu0 %1309  ;;  %1910 = vmatprep.subr.bf16.mxu0 %v2171_v28  ;;  %2180 = vmatprep.mubr.msk.bf16.mxu1 %vm911_vm0, %v2766_v19 }
 0x2a6   :  { %v1386_v30 = vrot.slane %v1380_v40, 4  ;;  %v1319_v9 = vrot.slane %v1310_v6, 4  ;;  %1911 = vmatpush1.bf16.msra.mxu0 %v2170_v17  ;;  %v2165_v39 = vcombine.low %v1442_v12, %v1447_v33  ;;  %v2166_v49 = vcombine.high %v1442_v12, %v1447_v33  ;;  %v2229_v33 = vld [vmem:[#allocation3 + $0xb0] ss:$20 sps:$4 sm:$0xff]  }
 0x2a8   :  { %v1394_v5 = vsel %vm204_vm2, %v1385_v44, %v1386_v30  ;;  %v1396_v54 = vsel %vm430_vm4, %v1380_v40, %v1386_v30  ;;  %v1325_v7 = vsel %vm204_vm2, %v1318_v29, %v1319_v9  ;;  %v1327_v43 = vsel %vm365_vm5, %v1310_v6, %v1319_v9  ;;  %v2226_v47 = vld [vmem:[#allocation3 + $0x128] ss:$20 sps:$4 sm:$0xff]   ;;  %1912 = vmatprep.subr.bf16.mxu0 %v2166_v49 }
 0x2a9   :  { %v1395_v19 = vsel %vm430_vm4, %v2863_v3, %v1394_v5  ;;  %1408 = vst [vmem:[#allocation3 + $0xec] sm:$0xf] %v1396_v54  ;;  %v1316_v62 = vpop.permute.xlu1 %1315  ;;  %v1326_v53 = vsel %vm365_vm5, %v2813_v32, %v1325_v7  ;;  %1341 = vst [vmem:[#allocation3 + $0x88] sm:$0xf] %v1327_v43  ;;  %v1258_v44 = vpop.permute.xlu0 %1257  ;;  %1954 = vmatpush1.bf16.msra.mxu1 %v2226_v47 }
 0x2aa   :  { %v1322_v27 = vrot.slane %v1316_v62, 4  ;;  %v1267_v36 = vrot.slane %v1258_v44, 4  ;;  %1913 = vmatpush1.bf16.msra.mxu0 %v2165_v39  ;;  %v2160_v26 = vcombine.low %v1390_v13, %v1395_v19  ;;  %v2161_v29 = vcombine.high %v1390_v13, %v1395_v19  ;;  %1955 = vmatprep.subr.bf16.mxu1 %v2358_v1 }
 0x2ac   :  { %v1330_v37 = vsel %vm204_vm2, %v1321_v20, %v1322_v27  ;;  %v1332_v3 = vsel %vm365_vm5, %v1316_v62, %v1322_v27  ;;  %v1273_v32 = vsel %vm204_vm2, %v1266_v59, %v1267_v36  ;;  %v1275_v35 = vsel %vm312_vm6, %v1258_v44, %v1267_v36  ;;  %v2227_v25 = vld [vmem:[#allocation3 + $0x100] ss:$20 sps:$4 sm:$0xff]   ;;  %1914 = vmatprep.subr.bf16.mxu0 %v2161_v29 }
 0x2ad   :  { %v1331_v11 = vsel %vm365_vm5, %v2879_v4, %v1330_v37  ;;  %1344 = vst [vmem:[#allocation3 + $0x9c] sm:$0xf] %v1332_v3  ;;  %v1264_v2 = vpop.permute.xlu1 %1263  ;;  %v1274_v12 = vsel %vm312_vm6, %v2822_v57, %v1273_v32  ;;  %1289 = vst [vmem:[#allocation3 + $0x60] sm:$0xf] %v1275_v35  ;;  %v1206_v20 = vpop.permute.xlu0 %1205  ;;  %1956 = vmatpush1.bf16.msra.mxu1 %v2227_v25  ;;  %v1994_v36 = vstv %s2067_s4  ;;  %v2005_v29 = vstv %s2068_s26 }
 0x2ae   :  { %v1270_v18 = vrot.slane %v1264_v2, 4  ;;  %v1215_v61 = vrot.slane %v1206_v20, 4  ;;  %1915 = vmatpush1.bf16.msra.mxu0 %v2160_v26  ;;  %1957 = vmatprep.subr.bf16.mxu1 %v2358_v1 }
 0x2af   :  { %1916 = vmatprep.subr.bf16.mxu0 %v2253_v31  ;;  %v2151_v31 = vcombine.high %v1326_v53, %v1331_v11 }
 0x2b0   :  { %v1278_v59 = vsel %vm204_vm2, %v1269_v34, %v1270_v18  ;;  %v1280_v4 = vsel %vm312_vm6, %v1264_v2, %v1270_v18  ;;  %v1221_v57 = vsel %vm204_vm2, %v1214_v10, %v1215_v61  ;;  %v1223_v15 = vsel %vm259_vm7, %v1206_v20, %v1215_v61  ;;  %v2228_v17 = vld [vmem:[#allocation3 + $0xd8] ss:$20 sps:$4 sm:$0xff]   ;;  %v2237_v61 = vld [vmem:[#allocation8 + $0x8] sm:$0xff] }
 0x2b1   :  { %v1279_v28 = vsel %vm312_vm6, %v2889_v24, %v1278_v59  ;;  %1292 = vst [vmem:[#allocation3 + $0x74] sm:$0xf] %v1280_v4  ;;  %v1212_v21 = vpop.permute.xlu1 %1211  ;;  %v1222_v46 = vsel %vm259_vm7, %v2831_v63, %v1221_v57  ;;  %1237 = vst [vmem:[#allocation3 + $0x38] sm:$0xf] %v1223_v15  ;;  %v1154_v52 = vpop.permute.xlu0 %1153  ;;  %1958 = vmatpush1.bf16.msra.mxu1 %v2228_v17  ;;  %v2150_v10 = vcombine.low %v1326_v53, %v1331_v11  ;;  %v2236_v11 = vld [vmem:[#allocation8] sm:$0xff]  ;;  %v2238_v15 = vld [vmem:[#allocation8 + $0x28] sm:$0xff] }
 0x2b2   :  { %v1218_v34 = vrot.slane %v1212_v21, 4  ;;  %v1163_v8 = vrot.slane %v1154_v52, 4  ;;  %1917 = vmatpush1.bf16.msra.mxu0 %v2252_v56  ;;  %1959 = vmatprep.subr.bf16.mxu1 %v2358_v1 }
 0x2b3   :  { %1918 = vmatprep.subr.bf16.mxu0 %v2151_v31 }
 0x2b4   :  { %v1226_v24 = vsel %vm204_vm2, %v1217_v23, %v1218_v34  ;;  %v1228_v63 = vsel %vm259_vm7, %v1212_v21, %v1218_v34  ;;  %v1169_v22 = vsel %vm204_vm2, %v1162_v16, %v1163_v8  ;;  %v1171_v38 = vsel %vm206_vm8, %v1154_v52, %v1163_v8  ;;  %v2230_v39 = vld [vmem:[#allocation3 + $0x88] ss:$20 sps:$4 sm:$0xff]  }
 0x2b5   :  { %v1227_v45 = vsel %vm259_vm7, %v2901_v41, %v1226_v24  ;;  %1240 = vst [vmem:[#allocation3 + $0x4c] sm:$0xf] %v1228_v63  ;;  %v1160_v51 = vpop.permute.xlu1 %1159  ;;  %v1170_v56 = vsel %vm206_vm8, %v2840_v14, %v1169_v22  ;;  %1185 = vst [vmem:[#allocation3 + $0x10] sm:$0xf] %v1171_v38  ;;  %v1530_v40 = vpop.permute.xlu0 %1529  ;;  %v2146_v23 = vcombine.high %v1274_v12, %v1279_v28  ;;  %1960 = vmatpush1.bf16.msra.mxu1 %v2229_v33  ;;  %v2240_v33 = vld [vmem:[#allocation8 + $0x10] sm:$0xff] }
 0x2b6   :  { %v1166_v13 = vrot.slane %v1160_v51, 4  ;;  %v1539_v6 = vrot.slane %v1530_v40, 4  ;;  %1919 = vmatpush1.bf16.msra.mxu0 %v2150_v10  ;;  %1961 = vmatprep.subr.bf16.mxu1 %v2358_v1  ;;  %v2145_v16 = vcombine.low %v1274_v12, %v1279_v28  ;;  %v2141_v7 = vcombine.high %v1222_v46, %v1227_v45 }
 0x2b7   :  { %1920 = vmatprep.subr.bf16.mxu0 %v2146_v23  ;;  %v2140_v47 = vcombine.low %v1222_v46, %v1227_v45  ;;  %v2239_v46 = vld [vmem:[#allocation8 + $0x30] sm:$0xff] }
 0x2b8   :  { %v1174_v41 = vsel %vm204_vm2, %v1165_v58, %v1166_v13  ;;  %v1176_v30 = vsel %vm206_vm8, %v1160_v51, %v1166_v13  ;;  %v1545_v14 = vsel %vm204_vm2, %v1538_v0, %v1539_v6  ;;  %v1547_v9 = vsel %vm589_vm9, %v1530_v40, %v1539_v6 }
 0x2b9   :  { %v1175_v49 = vsel %vm206_vm8, %v2910_v55, %v1174_v41  ;;  %1188 = vst [vmem:[#allocation3 + $0x24] sm:$0xf] %v1176_v30  ;;  %v1536_v5 = vpop.permute.xlu1 %1535  ;;  %v1546_v54 = vsel %vm589_vm9, %v2870_v50, %v1545_v14  ;;  %1561 = vst [vmem:[#allocation3 + $0x150] sm:$0xf] %v1547_v9  ;;  %1962 = vmatpush1.bf16.msra.mxu1 %v2230_v39  ;;  %v2231_v55 = vld [vmem:[#allocation3 + $0x60] ss:$20 sps:$4 sm:$0xff]  }
 0x2ba   :  { %v1542_v58 = vrot.slane %v1536_v5, 4  ;;  %1921 = vmatpush1.bf16.msra.mxu0 %v2145_v16  ;;  %1963 = vmatprep.subr.bf16.mxu1 %v2358_v1  ;;  %v2136_v50 = vcombine.high %v1170_v56, %v1175_v49  ;;  %v2135_v53 = vcombine.low %v1170_v56, %v1175_v49  ;;  %v2241_v41 = vld [vmem:[#allocation8 + $0x18] sm:$0xff]  ;;  %v2242_v49 = vld [vmem:[#allocation8 + $0x20] sm:$0xff] }
 0x2bb   :  { %1922 = vmatprep.subr.bf16.mxu0 %v2141_v7  ;;  %v2243_v7 = vld [vmem:[#allocation8 + $0x38] sm:$0xff] }
 0x2bc   :  { %v1550_v0 = vsel %vm204_vm2, %v1541_v48, %v1542_v58  ;;  %v1552_v43 = vsel %vm589_vm9, %v1536_v5, %v1542_v58  ;;  %v2232_v62 = vld [vmem:[#allocation3 + $0x38] ss:$20 sps:$4 sm:$0xff]  }
 0x2bd   :  { %v1551_v19 = vsel %vm589_vm9, %v2919_v42, %v1550_v0  ;;  %1564 = vst [vmem:[#allocation3 + $0x164] sm:$0xf] %v1552_v43  ;;  %1964 = vmatpush1.bf16.msra.mxu1 %v2231_v55 }
 0x2be   :  { %1923 = vmatpush1.bf16.msra.mxu0 %v2140_v47  ;;  %1965 = vmatprep.subr.bf16.mxu1 %v2358_v1  ;;  %v2176_v44 = vcombine.high %v1546_v54, %v1551_v19  ;;  %v2175_v27 = vcombine.low %v1546_v54, %v1551_v19 }
 0x2bf   :  { %1924 = vmatprep.subr.bf16.mxu0 %v2136_v50 }
 0x2c0   :  { %v2233_v48 = vld [vmem:[#allocation3 + $0x10] ss:$20 sps:$4 sm:$0xff]  }
 0x2c1   :  { %1966 = vmatpush1.bf16.msra.mxu1 %v2232_v62  ;;  %v2244_v62 = vld [vmem:[#allocation8 + $0x40] sm:$0xff] }
 0x2c2   :  { %1925 = vmatpush1.bf16.msra.mxu0 %v2135_v53  ;;  %1967 = vmatprep.subr.bf16.mxu1 %v2358_v1 }
 0x2c3   :  { %1940 = vmatprep.subr.bf16.mxu0 %v2176_v44  ;;  %v2245_v44 = vld [vmem:[#allocation8 + $0x48] sm:$0xff] }
 0x2c4   :  { %v2234_v42 = vld [vmem:[#allocation3 + $0x150] ss:$20 sps:$4 sm:$0xff]  }
 0x2c5   :  { %1968 = vmatpush1.bf16.msra.mxu1 %v2233_v48 }
 0x2c6   :  { %1941 = vmatpush2.bf16.msra.mxu0 %v2175_v27  ;;  %1983 = vmatprep.subr.bf16.mxu1 %v2358_v1 }
 0x2c9   :  { %1943 = vmatmul.mubr.bf16.vlgmr.msra.gmra.mxu0 %v2944_v60  ;;  %1984 = vmatpush2.bf16.msra.mxu1 %v2234_v42 }
 0x2cc   :  { %1986 = vmatmul.mubr.bf16.vlgmr.msra.gmra.mxu1 %v2944_v60 }
 0x364   :  { %v1901_v26 = vpop.f32.mrf.mxu1 }
 0x365   :  { %v1995_v37 = vmul.f32 %v1994_v36, %v1901_v26 }
 0x366   :  { %v1903_v3 = vpop.f32.mrf.mxu1 }
 0x367   :  { %v2006_v32 = vadd.f32 %v2005_v29, %v1995_v37  ;;  %v1996_v35 = vmul.f32 %v1994_v36, %v1903_v3 }
 0x368   :  { %v1905_v25 = vpop.f32.mrf.mxu1 }
 0x369   :  { %v2016_v2 = vadd.f32 %v2236_v11, %v2006_v32  ;;  %v2007_v12 = vadd.f32 %v2005_v29, %v1996_v35  ;;  %v2000_v1 = vmul.f32 %v1994_v36, %v1905_v25 }
 0x36a   :  { %v1907_v20 = vpop.f32.mrf.mxu1 }
 0x36b   :  { %v2026_v18 = vmax.f32 %v2016_v2, 0.0  ;;  %v2017_v59 = vadd.f32 %v2237_v61, %v2007_v12  ;;  %v2011_v4 = vadd.f32 %v2005_v29, %v2000_v1  ;;  %v2001_v60 = vmul.f32 %v1994_v36, %v1907_v20 }
 0x36d   :  { %2036 = vst [vmem:[#allocation12] sm:$0xff] %v2026_v18  ;;  %v2027_v57 = vmax.f32 %v2017_v59, 0.0  ;;  %v2021_v17 = vadd.f32 %v2238_v15, %v2011_v4  ;;  %v2012_v28 = vadd.f32 %v2005_v29, %v2001_v60 }
 0x36f   :  { %2037 = vst [vmem:[#allocation12 + $0x8] sm:$0xff] %v2027_v57  ;;  %v2031_v21 = vmax.f32 %v2021_v17, 0.0  ;;  %v2022_v52 = vadd.f32 %v2239_v46, %v2012_v28 }
 0x371   :  { %2041 = vst [vmem:[#allocation12 + $0x28] sm:$0xff] %v2031_v21  ;;  %v2032_v31 = vmax.f32 %v2022_v52, 0.0 }
 0x373   :  { %2042 = vst [vmem:[#allocation12 + $0x30] sm:$0xff] %v2032_v31 }
 0x389   :  { %v1944_v34 = vpop.f32.mrf.mxu0 }
 0x38a   :  { %v1997_v8 = vmul.f32 %v1994_v36, %v1944_v34 }
 0x38b   :  { %v1946_v10 = vpop.f32.mrf.mxu0 }
 0x38c   :  { %v2008_v24 = vadd.f32 %v2005_v29, %v1997_v8  ;;  %v1998_v63 = vmul.f32 %v1994_v36, %v1946_v10  ;;  %v1987_v22 = vpop.f32.mrf.mxu1 }
 0x38d   :  { %v1948_v38 = vpop.f32.mrf.mxu0  ;;  %v1999_v51 = vmul.f32 %v1994_v36, %v1987_v22 }
 0x38e   :  { %v2018_v45 = vadd.f32 %v2240_v33, %v2008_v24  ;;  %v2009_v56 = vadd.f32 %v2005_v29, %v1998_v63  ;;  %v2002_v40 = vmul.f32 %v1994_v36, %v1948_v38  ;;  %v1989_v23 = vpop.f32.mrf.mxu1 }
 0x38f   :  { %v1950_v13 = vpop.f32.mrf.mxu0  ;;  %v2010_v16 = vadd.f32 %v2005_v29, %v1999_v51 }
 0x390   :  { %v2028_v6 = vmax.f32 %v2018_v45, 0.0  ;;  %v2019_v30 = vadd.f32 %v2241_v41, %v2009_v56  ;;  %v2013_v14 = vadd.f32 %v2005_v29, %v2002_v40  ;;  %v1990_v9 = vpop.f32.mrf.mxu1  ;;  %v2003_v39 = vmul.f32 %v1994_v36, %v1950_v13 }
 0x391   :  { %v2020_v5 = vadd.f32 %v2242_v49, %v2010_v16  ;;  %v2004_v0 = vmul.f32 %v1994_v36, %v1990_v9 }
 0x392   :  { %2038 = vst [vmem:[#allocation12 + $0x10] sm:$0xff] %v2028_v6  ;;  %v2029_v54 = vmax.f32 %v2019_v30, 0.0  ;;  %v2023_v58 = vadd.f32 %v2243_v7, %v2013_v14  ;;  %v2014_v43 = vadd.f32 %v2005_v29, %v2003_v39  ;;  %v1992_v55 = vpop.f32.mrf.mxu1 }
 0x393   :  { %v2030_v47 = vmax.f32 %v2020_v5, 0.0  ;;  %v2015_v50 = vadd.f32 %v2005_v29, %v2004_v0 }
 0x394   :  { %2039 = vst [vmem:[#allocation12 + $0x18] sm:$0xff] %v2029_v54  ;;  %v2033_v19 = vmax.f32 %v2023_v58, 0.0  ;;  %v2024_v53 = vadd.f32 %v2244_v62, %v2014_v43 }
 0x395   :  { %2040 = vst [vmem:[#allocation12 + $0x20] sm:$0xff] %v2030_v47  ;;  %v2025_v48 = vadd.f32 %v2245_v44, %v2015_v50 }
 0x396   :  { %2043 = vst [vmem:[#allocation12 + $0x38] sm:$0xff] %v2033_v19  ;;  %v2034_v27 = vmax.f32 %v2024_v53, 0.0 }
 0x397   :  { %v2035_v42 = vmax.f32 %v2025_v48, 0.0 }
 0x398   :  { %2044 = vst [vmem:[#allocation12 + $0x40] sm:$0xff] %v2034_v27 }
 0x399   :  { %2045 = vst [vmem:[#allocation12 + $0x48] sm:$0xff] %v2035_v42 }
 0x39a   :  { %2333 = shalt.err (!%p2330_p5)
}
 0x39b   :  { %2057 = dma.vmem_to_hbm [thread:$0]  %s2052_s28, 1280, %s3059_s5, [#allocation6], %s2355_s6, %s2355_s6, %s2356_s7  }
 0x39c   :  { %2348 = dma.done.wait [#allocation6], 1280  }
 0x39d   :  { %2349 = vsyncadd [#allocation6], 4294966016 }
 0x39e   :  { %2061 = vsyncpa [#allocation5], 1 }
 0x39f   :  { %2062 = vsyncpa [#allocation10], 1 }
 0x3a0   :  { %2063 = vsyncpa [#allocation6], 1 }
 0x3a1   :  { %2064 = vsyncpa [#allocation7], 1 }

</bundles_post_ra>
